<compile_context>
chip_gen: v6e
topology: v6e:2x2x1
jax: 0.10.0
libtpu: 0.0.40
codegen_flags: <defaults>
</compile_context>

<pallas_src>
import functools

import jax
import jax.numpy as jnp
from jax import lax
from jax.experimental import pallas as pl
from jax.experimental.pallas import tpu as pltpu


def _rvq_kernel(x_ref, cba_ref, cbt_ref, out_ref, *,
                n_codebooks, codebook_size, embedding_dim, e_pad):
    """One grid step processes an (E, tile_hw) slab of one batch element.

    x_ref   : (E, tile_hw)              f32  token tile (tokens on lanes)
    cba_ref : (n_cb, K, E_pad)          f32  augmented codebooks:
                                             [:, :, :E] = -codebook,
                                             [:, :, E]  = 0.5*||codebook||^2
    cbt_ref : (n_cb, E_pad, K)          f32  codebook^T, zero-padded rows E..
    out_ref : (E, tile_hw)              f32  sum of quantized vectors
    """
    E = embedding_dim
    K = codebook_size
    x = x_ref[...]                                          # (E, tn)
    tn = x.shape[-1]

    # Augmented residual: rows 0..E-1 = residual, rows E.. = 1 (the row at
    # index E multiplies the 0.5*||c||^2 column; extra pad rows hit zero
    # columns of cba, and zero rows of cbt keep them fixed at 1).
    ones_pad = jnp.ones((e_pad - E, tn), jnp.float32)
    residual = jnp.concatenate([x, ones_pad], axis=0)       # (E_pad, tn)

    acc = jnp.zeros((e_pad, tn), jnp.float32)

    # codebook-entry index along the sublane axis: first-match argmin + gather.
    row_iota = lax.broadcasted_iota(jnp.int32, (K, tn), 0)

    for k in range(n_codebooks):                            # static unroll
        # distances (up to a per-token constant and a x0.5 scale), straight
        # from the MXU:  dists[i, t] = 0.5*||c_i||^2 - c_i . r_t
        dists = jnp.dot(cba_ref[k], residual,
                        preferred_element_type=jnp.float32)           # (K, tn)

        # first-index argmin over the codebook axis (matches torch.argmin ties)
        min_d = jnp.min(dists, axis=0, keepdims=True)                  # (1, tn)
        idx = jnp.min(jnp.where(dists == min_d, row_iota, K),
                      axis=0, keepdims=True)                           # (1, tn)

        # exact gather via one-hot matmul on the MXU: (E_pad,K)@(K,tn)
        onehot = (row_iota == idx).astype(jnp.float32)                 # (K, tn)
        quant = jnp.dot(cbt_ref[k], onehot,
                        preferred_element_type=jnp.float32)            # (E_pad, tn)

        acc = acc + quant              # rows E.. of quant are exactly 0
        residual = residual - quant    # constant-1 rows stay 1

    out_ref[...] = acc[:E, :]


def _default_tile_hw(HW):
    """Largest lane-aligned (multiple of 128) divisor of HW up to 4096.

    No grid>=2 constraint: v5e/v6e have a single TensorCore, and on v7x the
    batch grid axis provides the two-TC sharding.
    """
    for t in (4096, 2048, 1024, 512, 256, 128):
        if HW % t == 0:
            return t
    # TODO(synk): masked tail tile so non-multiple-of-128 H*W gets lane-dense
    # stores too; full-extent fallback is correct but uses masked stores.
    return HW


def residual_vq_forward(embeddings, codebooks, *, tile_hw=None):
    """embeddings: [B, E, H, W] f32; codebooks: [n_codebooks, K, E] f32."""
    B, E, H, W = embeddings.shape
    n_codebooks, K, E2 = codebooks.shape
    assert E == E2
    HW = H * W
    if tile_hw is None:
        tile_hw = _default_tile_hw(HW)
    assert HW % tile_hw == 0, "tile_hw must divide H*W"

    embeddings = embeddings.astype(jnp.float32)
    codebooks = codebooks.astype(jnp.float32)

    # Free, contiguous reshape: tokens (h*w) land on lanes, E on sublanes.
    x3 = embeddings.reshape(B, E, HW)

    # Loop-invariant precomputation (codebook-sized, negligible):
    # augmented "distance" codebook and zero-padded gather codebook.
    e_pad = ((E + 1 + 7) // 8) * 8                                  # sublane-aligned
    csq_half = 0.5 * jnp.sum(codebooks * codebooks, axis=-1)        # (n_cb, K)
    cba = jnp.concatenate(
        [-codebooks,
         csq_half[..., None],
         jnp.zeros((n_codebooks, K, e_pad - E - 1), jnp.float32)],
        axis=-1)                                                    # (n_cb, K, E_pad)
    cbt = jnp.concatenate(
        [jnp.transpose(codebooks, (0, 2, 1)),
         jnp.zeros((n_codebooks, e_pad - E, K), jnp.float32)],
        axis=1)                                                     # (n_cb, E_pad, K)

    kernel = functools.partial(
        _rvq_kernel, n_codebooks=n_codebooks, codebook_size=K,
        embedding_dim=E, e_pad=e_pad)

    out3 = pl.pallas_call(
        kernel,
        out_shape=jax.ShapeDtypeStruct((B, E, HW), jnp.float32),
        grid_spec=pltpu.PrefetchScalarGridSpec(
            num_scalar_prefetch=0,
            grid=(B, HW // tile_hw),
            in_specs=[
                # squeezed batch dim: kernel sees an (E, tile_hw) slab
                pl.BlockSpec((pl.Squeezed(), E, tile_hw), lambda b, i: (b, 0, i)),
                # tiny, loop-invariant codebook operands: constant index_map
                # -> fetched once, resident in VMEM
                pl.BlockSpec((n_codebooks, K, e_pad), lambda b, i: (0, 0, 0)),
                pl.BlockSpec((n_codebooks, e_pad, K), lambda b, i: (0, 0, 0)),
            ],
            out_specs=pl.BlockSpec((pl.Squeezed(), E, tile_hw),
                                   lambda b, i: (b, 0, i)),
        ),
        compiler_params=pltpu.CompilerParams(
            dimension_semantics=("parallel", "parallel")),
    )(x3, cba, cbt)

    # Free reshape back to NCHW.
    return out3.reshape(B, E, H, W)


def residual_vq_reference(embeddings, codebooks):
    """Plain-JAX reference of the same forward pass (for validation)."""
    B, E, H, W = embeddings.shape
    x = jnp.transpose(embeddings, (0, 2, 3, 1)).reshape(-1, E)
    residual = x
    acc = jnp.zeros_like(x)
    for k in range(codebooks.shape[0]):
        cb = codebooks[k]
        d = (jnp.sum(residual**2, -1, keepdims=True)
             - 2.0 * residual @ cb.T
             + jnp.sum(cb**2, -1)[None, :])
        idx = jnp.argmin(d, axis=-1)
        q = cb[idx]
        acc = acc + q
        residual = residual - q
    return jnp.transpose(acc.reshape(B, H, W, E), (0, 3, 1, 2))


if __name__ == "__main__":
    # Module hyperparameters (synthetic, deterministic init).
    codebook_size = 64
    embedding_dim = 32
    n_codebooks = 4

    # Small input consistent with encode()'s [batch, embedding, height, width].
    B, H, W = 2, 16, 16

    key = jax.random.PRNGKey(0)
    k_x, k_cb = jax.random.split(key)

    embeddings = jax.random.normal(
        k_x, (B, embedding_dim, H, W), dtype=jnp.float32)

    # nn.Embedding weights: uniform(-1/codebook_size, 1/codebook_size).
    init_size = 1.0 / codebook_size
    codebooks = jax.random.uniform(
        k_cb, (n_codebooks, codebook_size, embedding_dim),
        minval=-init_size, maxval=init_size, dtype=jnp.float32)

    out = residual_vq_forward(embeddings, codebooks)
    out = jax.block_until_ready(out)

    ref = residual_vq_reference(embeddings, codebooks)
    assert out.shape == (B, embedding_dim, H, W)
    assert jnp.allclose(out, ref, atol=1e-5, rtol=1e-5), "mismatch vs reference"

    print("KERNEL_OK")
</pallas_src>

<mosaic_0001>
module attributes {stable_mosaic.version = 11 : i64} {
  func.func @_rvq_kernel(%arg0: i32, %arg1: i32, %arg2: memref<1x32x256xf32, #tpu.memory_space<vmem>>, %arg3: memref<4x64x40xf32, #tpu.memory_space<vmem>>, %arg4: memref<4x40x64xf32, #tpu.memory_space<vmem>>, %arg5: memref<1x32x256xf32, #tpu.memory_space<vmem>>) attributes {dimension_semantics = [#tpu.dimension_semantics<parallel>, #tpu.dimension_semantics<parallel>], iteration_bounds = array<i64: 2, 1>, scalar_prefetch = 0 : i64, scratch_operands = 0 : i64, tpu.core_type = #tpu.core_type<tc>, window_params = [{transform_indices = @transform_0, window_bounds = array<i64: 1, 32, 256>}, {pipeline_mode = #tpu.pipeline_mode<synchronous>, transform_indices = @transform_1, window_bounds = array<i64: 4, 64, 40>}, {pipeline_mode = #tpu.pipeline_mode<synchronous>, transform_indices = @transform_2, window_bounds = array<i64: 4, 40, 64>}, {transform_indices = @transform_3, window_bounds = array<i64: 1, 32, 256>}]} {
    %c0 = arith.constant 0 : index
    %c0_0 = arith.constant 0 : index
    %c0_1 = arith.constant 0 : index
    %0 = vector.load %arg2[%c0, %c0_0, %c0_1] : memref<1x32x256xf32, #tpu.memory_space<vmem>>, vector<1x32x256xf32>
    %1 = vector.shape_cast %0 : vector<1x32x256xf32> to vector<32x256xf32>
    %cst = arith.constant 1.000000e+00 : f32
    %2 = vector.broadcast %cst : f32 to vector<8x256xf32>
    %3 = tpu.concatenate %1, %2 in 0 : vector<32x256xf32>, vector<8x256xf32> -> vector<40x256xf32>
    %cst_2 = arith.constant 0.000000e+00 : f32
    %4 = vector.broadcast %cst_2 : f32 to vector<40x256xf32>
    %5 = tpu.iota {dimensions = array<i32: 0>} : vector<64x256xi32>
    %c0_3 = arith.constant 0 : index
    %c0_4 = arith.constant 0 : index
    %c0_5 = arith.constant 0 : index
    %6 = vector.load %arg3[%c0_3, %c0_4, %c0_5] : memref<4x64x40xf32, #tpu.memory_space<vmem>>, vector<1x64x40xf32>
    %7 = vector.shape_cast %6 : vector<1x64x40xf32> to vector<64x40xf32>
    %cst_6 = arith.constant dense<0.000000e+00> : vector<64x256xf32>
    %8 = tpu.matmul %7, %3, %cst_6 {dimension_numbers = #tpu.dot_dimension_numbers<[1], [0], [0], [1], [0, 0, 1, 1], [], []>} : vector<64x40xf32>, vector<40x256xf32>, vector<64x256xf32> -> vector<64x256xf32>
    %cst_7 = arith.constant dense<0x7F800000> : vector<256xf32>
    %9 = vector.multi_reduction <minimumf>, %8, %cst_7 [0] : vector<64x256xf32> to vector<256xf32>
    %10 = vector.shape_cast %9 : vector<256xf32> to vector<1x256xf32>
    %11 = vector.broadcast %10 : vector<1x256xf32> to vector<64x256xf32>
    %12 = arith.cmpf oeq, %8, %11 : vector<64x256xf32>
    %c64_i32 = arith.constant 64 : i32
    %13 = vector.broadcast %c64_i32 : i32 to vector<64x256xi32>
    %14 = arith.select %12, %5, %13 : vector<64x256xi1>, vector<64x256xi32>
    %cst_8 = arith.constant dense<2147483647> : vector<256xi32>
    %15 = vector.multi_reduction <minsi>, %14, %cst_8 [0] : vector<64x256xi32> to vector<256xi32>
    %16 = vector.shape_cast %15 : vector<256xi32> to vector<1x256xi32>
    %17 = vector.broadcast %16 : vector<1x256xi32> to vector<64x256xi32>
    %18 = arith.cmpi eq, %5, %17 : vector<64x256xi32>
    %19 = arith.extui %18 : vector<64x256xi1> to vector<64x256xi32>
    %20 = arith.sitofp %19 : vector<64x256xi32> to vector<64x256xf32>
    %c0_9 = arith.constant 0 : index
    %c0_10 = arith.constant 0 : index
    %c0_11 = arith.constant 0 : index
    %21 = vector.load %arg4[%c0_9, %c0_10, %c0_11] : memref<4x40x64xf32, #tpu.memory_space<vmem>>, vector<1x40x64xf32>
    %22 = vector.shape_cast %21 : vector<1x40x64xf32> to vector<40x64xf32>
    %cst_12 = arith.constant dense<0.000000e+00> : vector<40x256xf32>
    %23 = tpu.matmul %22, %20, %cst_12 {dimension_numbers = #tpu.dot_dimension_numbers<[1], [0], [0], [1], [0, 0, 1, 1], [], []>} : vector<40x64xf32>, vector<64x256xf32>, vector<40x256xf32> -> vector<40x256xf32>
    %24 = arith.addf %4, %23 : vector<40x256xf32>
    %25 = arith.subf %3, %23 : vector<40x256xf32>
    %c1 = arith.constant 1 : index
    %c0_13 = arith.constant 0 : index
    %c0_14 = arith.constant 0 : index
    %26 = vector.load %arg3[%c1, %c0_13, %c0_14] : memref<4x64x40xf32, #tpu.memory_space<vmem>>, vector<1x64x40xf32>
    %27 = vector.shape_cast %26 : vector<1x64x40xf32> to vector<64x40xf32>
    %cst_15 = arith.constant dense<0.000000e+00> : vector<64x256xf32>
    %28 = tpu.matmul %27, %25, %cst_15 {dimension_numbers = #tpu.dot_dimension_numbers<[1], [0], [0], [1], [0, 0, 1, 1], [], []>} : vector<64x40xf32>, vector<40x256xf32>, vector<64x256xf32> -> vector<64x256xf32>
    %cst_16 = arith.constant dense<0x7F800000> : vector<256xf32>
    %29 = vector.multi_reduction <minimumf>, %28, %cst_16 [0] : vector<64x256xf32> to vector<256xf32>
    %30 = vector.shape_cast %29 : vector<256xf32> to vector<1x256xf32>
    %31 = vector.broadcast %30 : vector<1x256xf32> to vector<64x256xf32>
    %32 = arith.cmpf oeq, %28, %31 : vector<64x256xf32>
    %c64_i32_17 = arith.constant 64 : i32
    %33 = vector.broadcast %c64_i32_17 : i32 to vector<64x256xi32>
    %34 = arith.select %32, %5, %33 : vector<64x256xi1>, vector<64x256xi32>
    %cst_18 = arith.constant dense<2147483647> : vector<256xi32>
    %35 = vector.multi_reduction <minsi>, %34, %cst_18 [0] : vector<64x256xi32> to vector<256xi32>
    %36 = vector.shape_cast %35 : vector<256xi32> to vector<1x256xi32>
    %37 = vector.broadcast %36 : vector<1x256xi32> to vector<64x256xi32>
    %38 = arith.cmpi eq, %5, %37 : vector<64x256xi32>
    %39 = arith.extui %38 : vector<64x256xi1> to vector<64x256xi32>
    %40 = arith.sitofp %39 : vector<64x256xi32> to vector<64x256xf32>
    %c1_19 = arith.constant 1 : index
    %c0_20 = arith.constant 0 : index
    %c0_21 = arith.constant 0 : index
    %41 = vector.load %arg4[%c1_19, %c0_20, %c0_21] : memref<4x40x64xf32, #tpu.memory_space<vmem>>, vector<1x40x64xf32>
    %42 = vector.shape_cast %41 : vector<1x40x64xf32> to vector<40x64xf32>
    %cst_22 = arith.constant dense<0.000000e+00> : vector<40x256xf32>
    %43 = tpu.matmul %42, %40, %cst_22 {dimension_numbers = #tpu.dot_dimension_numbers<[1], [0], [0], [1], [0, 0, 1, 1], [], []>} : vector<40x64xf32>, vector<64x256xf32>, vector<40x256xf32> -> vector<40x256xf32>
    %44 = arith.addf %24, %43 : vector<40x256xf32>
    %45 = arith.subf %25, %43 : vector<40x256xf32>
    %c2 = arith.constant 2 : index
    %c0_23 = arith.constant 0 : index
    %c0_24 = arith.constant 0 : index
    %46 = vector.load %arg3[%c2, %c0_23, %c0_24] : memref<4x64x40xf32, #tpu.memory_space<vmem>>, vector<1x64x40xf32>
    %47 = vector.shape_cast %46 : vector<1x64x40xf32> to vector<64x40xf32>
    %cst_25 = arith.constant dense<0.000000e+00> : vector<64x256xf32>
    %48 = tpu.matmul %47, %45, %cst_25 {dimension_numbers = #tpu.dot_dimension_numbers<[1], [0], [0], [1], [0, 0, 1, 1], [], []>} : vector<64x40xf32>, vector<40x256xf32>, vector<64x256xf32> -> vector<64x256xf32>
    %cst_26 = arith.constant dense<0x7F800000> : vector<256xf32>
    %49 = vector.multi_reduction <minimumf>, %48, %cst_26 [0] : vector<64x256xf32> to vector<256xf32>
    %50 = vector.shape_cast %49 : vector<256xf32> to vector<1x256xf32>
    %51 = vector.broadcast %50 : vector<1x256xf32> to vector<64x256xf32>
    %52 = arith.cmpf oeq, %48, %51 : vector<64x256xf32>
    %c64_i32_27 = arith.constant 64 : i32
    %53 = vector.broadcast %c64_i32_27 : i32 to vector<64x256xi32>
    %54 = arith.select %52, %5, %53 : vector<64x256xi1>, vector<64x256xi32>
    %cst_28 = arith.constant dense<2147483647> : vector<256xi32>
    %55 = vector.multi_reduction <minsi>, %54, %cst_28 [0] : vector<64x256xi32> to vector<256xi32>
    %56 = vector.shape_cast %55 : vector<256xi32> to vector<1x256xi32>
    %57 = vector.broadcast %56 : vector<1x256xi32> to vector<64x256xi32>
    %58 = arith.cmpi eq, %5, %57 : vector<64x256xi32>
    %59 = arith.extui %58 : vector<64x256xi1> to vector<64x256xi32>
    %60 = arith.sitofp %59 : vector<64x256xi32> to vector<64x256xf32>
    %c2_29 = arith.constant 2 : index
    %c0_30 = arith.constant 0 : index
    %c0_31 = arith.constant 0 : index
    %61 = vector.load %arg4[%c2_29, %c0_30, %c0_31] : memref<4x40x64xf32, #tpu.memory_space<vmem>>, vector<1x40x64xf32>
    %62 = vector.shape_cast %61 : vector<1x40x64xf32> to vector<40x64xf32>
    %cst_32 = arith.constant dense<0.000000e+00> : vector<40x256xf32>
    %63 = tpu.matmul %62, %60, %cst_32 {dimension_numbers = #tpu.dot_dimension_numbers<[1], [0], [0], [1], [0, 0, 1, 1], [], []>} : vector<40x64xf32>, vector<64x256xf32>, vector<40x256xf32> -> vector<40x256xf32>
    %64 = arith.addf %44, %63 : vector<40x256xf32>
    %65 = arith.subf %45, %63 : vector<40x256xf32>
    %c3 = arith.constant 3 : index
    %c0_33 = arith.constant 0 : index
    %c0_34 = arith.constant 0 : index
    %66 = vector.load %arg3[%c3, %c0_33, %c0_34] : memref<4x64x40xf32, #tpu.memory_space<vmem>>, vector<1x64x40xf32>
    %67 = vector.shape_cast %66 : vector<1x64x40xf32> to vector<64x40xf32>
    %cst_35 = arith.constant dense<0.000000e+00> : vector<64x256xf32>
    %68 = tpu.matmul %67, %65, %cst_35 {dimension_numbers = #tpu.dot_dimension_numbers<[1], [0], [0], [1], [0, 0, 1, 1], [], []>} : vector<64x40xf32>, vector<40x256xf32>, vector<64x256xf32> -> vector<64x256xf32>
    %cst_36 = arith.constant dense<0x7F800000> : vector<256xf32>
    %69 = vector.multi_reduction <minimumf>, %68, %cst_36 [0] : vector<64x256xf32> to vector<256xf32>
    %70 = vector.shape_cast %69 : vector<256xf32> to vector<1x256xf32>
    %71 = vector.broadcast %70 : vector<1x256xf32> to vector<64x256xf32>
    %72 = arith.cmpf oeq, %68, %71 : vector<64x256xf32>
    %c64_i32_37 = arith.constant 64 : i32
    %73 = vector.broadcast %c64_i32_37 : i32 to vector<64x256xi32>
    %74 = arith.select %72, %5, %73 : vector<64x256xi1>, vector<64x256xi32>
    %cst_38 = arith.constant dense<2147483647> : vector<256xi32>
    %75 = vector.multi_reduction <minsi>, %74, %cst_38 [0] : vector<64x256xi32> to vector<256xi32>
    %76 = vector.shape_cast %75 : vector<256xi32> to vector<1x256xi32>
    %77 = vector.broadcast %76 : vector<1x256xi32> to vector<64x256xi32>
    %78 = arith.cmpi eq, %5, %77 : vector<64x256xi32>
    %79 = arith.extui %78 : vector<64x256xi1> to vector<64x256xi32>
    %80 = arith.sitofp %79 : vector<64x256xi32> to vector<64x256xf32>
    %c3_39 = arith.constant 3 : index
    %c0_40 = arith.constant 0 : index
    %c0_41 = arith.constant 0 : index
    %81 = vector.load %arg4[%c3_39, %c0_40, %c0_41] : memref<4x40x64xf32, #tpu.memory_space<vmem>>, vector<1x40x64xf32>
    %82 = vector.shape_cast %81 : vector<1x40x64xf32> to vector<40x64xf32>
    %cst_42 = arith.constant dense<0.000000e+00> : vector<40x256xf32>
    %83 = tpu.matmul %82, %80, %cst_42 {dimension_numbers = #tpu.dot_dimension_numbers<[1], [0], [0], [1], [0, 0, 1, 1], [], []>} : vector<40x64xf32>, vector<64x256xf32>, vector<40x256xf32> -> vector<40x256xf32>
    %84 = arith.addf %64, %83 : vector<40x256xf32>
    %85 = vector.extract_strided_slice %84 {offsets = [0, 0], sizes = [32, 256], strides = [1, 1]} : vector<40x256xf32> to vector<32x256xf32>
    %c0_43 = arith.constant 0 : index
    %c0_44 = arith.constant 0 : index
    %c0_45 = arith.constant 0 : index
    %86 = vector.load %arg5[%c0_43, %c0_44, %c0_45] : memref<1x32x256xf32, #tpu.memory_space<vmem>>, vector<1x32x256xf32>
    %87 = vector.shape_cast %86 : vector<1x32x256xf32> to vector<32x256xf32>
    %88 = vector.shape_cast %85 : vector<32x256xf32> to vector<1x32x256xf32>
    tpu.vector_store %arg5[%c0_43, %c0_44, %c0_45], %88 {strides = array<i32>} : memref<1x32x256xf32, #tpu.memory_space<vmem>>, vector<1x32x256xf32>,
    return
  }
  func.func @transform_0(%arg0: i32, %arg1: i32) -> (i32, i32, i32) {
    %c0_i32 = arith.constant 0 : i32
    %c0_i32_0 = arith.constant 0 : i32
    return %arg0, %c0_i32, %arg1 : i32, i32, i32
  }
  func.func @transform_1(%arg0: i32, %arg1: i32) -> (i32, i32, i32) {
    %c0_i32 = arith.constant 0 : i32
    %c0_i32_0 = arith.constant 0 : i32
    %c0_i32_1 = arith.constant 0 : i32
    %c0_i32_2 = arith.constant 0 : i32
    return %c0_i32, %c0_i32_0, %c0_i32_1 : i32, i32, i32
  }
  func.func @transform_2(%arg0: i32, %arg1: i32) -> (i32, i32, i32) {
    %c0_i32 = arith.constant 0 : i32
    %c0_i32_0 = arith.constant 0 : i32
    %c0_i32_1 = arith.constant 0 : i32
    %c0_i32_2 = arith.constant 0 : i32
    return %c0_i32, %c0_i32_0, %c0_i32_1 : i32, i32, i32
  }
  func.func @transform_3(%arg0: i32, %arg1: i32) -> (i32, i32, i32) {
    %c0_i32 = arith.constant 0 : i32
    %c0_i32_0 = arith.constant 0 : i32
    return %arg0, %c0_i32, %arg1 : i32, i32, i32
  }
}

</mosaic_0001>

<bundles_post_ra>
// kernel: tpu_custom_call.1
= control target key start
LH: loop header
LB: loop body
LE: loop exit
PB: predicated region body
PF: predicated region fallthrough
CT: control target
= control target key end

     0   :  { %8 = vsyncpa [#allocation3], 0  ;;  %s3361_s0 = inlined_call_operand.vmem [shape: f32[2,32,256], index: 0, kind: input, shape index: {}]   ;;  %s3362_s1 = inlined_call_operand.vmem [shape: f32[4,64,40], index: 1, kind: input, shape index: {}]   ;;  %s3363_s2 = inlined_call_operand.vmem [shape: f32[4,40,64], index: 2, kind: input, shape index: {}]   ;;  %s3364_s3 = inlined_call_operand.hbm [shape: f32[2,32,256], index: 3, kind: output, shape index: {}]  }
   0x1   :  { %10 = vsyncpa [#allocation3 + $0x1], 0  ;;  %s2432_s12 = smov 0   ;;  %s2434_s13 = smov 0  }
   0x2   :  { %s2436_s14 = smov 0   ;;  %s2438_s15 = smov 0  }
   0x3   :  { %s2440_s16 = smov 0   ;;  %s2442_s17 = smov 0  }
   0x4 LB: > { %s2036_s18 = sadd.s32 4294967295, %s2405_s17   ;;  %s2037_s19 = sadd.s32 4294967294, %s2405_s17   ;;  %s2405_s17 = sphi %s2442_s17, %s16_s17   ;;  %s2401_s16 = sphi %s2440_s16, %s3399_s16   ;;  %s2397_s15 = sphi %s2438_s15, %s3398_s15   ;;  %s2393_s14 = sphi %s2436_s14, %s3397_s14   ;;  %s2389_s13 = sphi %s2434_s13, %s3396_s13   ;;  %s2385_s12 = sphi %s2432_s12, %s3395_s12  }
   0x5   : > { %s28_s20 = sadd.s32 1, %s2401_s16  ;;  %s107_s21 = sadd.s32 1, %s2393_s14 }
   0x6   : > { %p30_p0 = scmp.ge.s32.totalorder %s28_s20, 2  ;;  %p117_p1 = scmp.ne.s32.totalorder %s2393_s14, %s2389_s13 }
   0x7   : > { %p118_p2 = scmp.eq.s32.totalorder %s2036_s18, 1  ;;  %p123_p3 = scmp.ne.s32.totalorder %s2389_s13, %s2385_s12 }
   0x8   : > { %s3401_s20 = smov (%p30_p0, %s28_s20), 0  ;;  %p124_p5 = scmp.eq.s32.totalorder %s2037_s19, 1 }
   0x9   : > { %p2472_p4 = por %p118_p2, %p117_p1  ;;  %s102_s23 = ssub.s32 %s2401_s16, %s3401_s20 }
   0xa   : > { %p2040_p6 = scmp.ge.s32.totalorder %s2405_s17, 1  ;;  %p105_p7 = scmp.eq.s32.totalorder %s102_s23, 0 }
   0xb   : > { %p2479_p8 = por %p124_p5, %p123_p3  ;;  %p161_p9 = scmp.lt.s32.totalorder %s2405_s17, 3 }
   0xc   : > { %s2485_s25 = scalar_select %p105_p7, %s2393_s14, %s107_s21  }
   0xd   : > { %p162_p10 = pnand %p2040_p6, %p161_p9 }
   0xf   : > { %165 = sbr.rel (%p162_p10) target bundleno = 2068 (0x814), region = 32 }
  0x14   : > { %p190_p11 = scmp.lt.s32.totalorder %s2397_s15, 1  ;;  %v3369_v0 = vmov 1.0   ;;  %v3367_v1 = vmov 0.0   ;;  %v217_v10 = vld [vmem:[%s3362_s1] sm:$0xff]  ;;  %vm225_vm0 = vcmask 326656   ;;  %v218_v11 = vld [vmem:[%s3362_s1 + $0x8] sm:$0xff]  ;;  %v208_v49 = vlaneseq }
  0x15   : > { %272 = vmatprep.subr.mxu0 %v3369_v0  ;;  %314 = vmatprep.mubr.f32.mxu0 %v3367_v1  ;;  %v219_v12 = vld [vmem:[%s3362_s1 + $0x10] sm:$0xff]  ;;  %v220_v13 = vld [vmem:[%s3362_s1 + $0x18] sm:$0xff]  ;;  %v221_v14 = vld [vmem:[%s3362_s1 + $0x20] sm:$0xff]  ;;  %s186_s6 = sand.u32 1, %s2389_s13   ;;  %s2269_s9 = sshll.u32 %s2397_s15, 10 }
  0x16   : > { %273 = vmatpush1.msra.mxu0 %v3369_v0  ;;  %s191_s26 = scalar_select %p190_p11, %s2397_s15, 1  ;;  %600 = vmatprep.mubr.f32.mxu1 %v3367_v1  ;;  %v222_v15 = vld [vmem:[%s3362_s1 + $0x28] sm:$0xff]  ;;  %v223_v16 = vld [vmem:[%s3362_s1 + $0x30] sm:$0xff]  ;;  %v224_v17 = vld [vmem:[%s3362_s1 + $0x38] sm:$0xff]  ;;  %v2584_v54 = vshrl.u32 %v208_v49, 7 }
  0x17   : > { %s2041_s7 = sshll.u32 %s186_s6, 6  ;;  %s3309_s19 = scalar_lea.hbm %s3364_s3, %s2269_s9 }
  0x18   : > { %s2268_s27 = sshll.u32 %s191_s26, 6  ;;  %v2587_v59 = vadd.s32 8, %v2584_v54  ;;  %v2590_v60 = vadd.s32 16, %v2584_v54  ;;  %v2593_v61 = vadd.s32 24, %v2584_v54  ;;  %v2596_v63 = vadd.s32 32, %v2584_v54  ;;  %s188_s8 = scalar_lea.vmem [#allocation2], %s2041_s7 }
  0x19   : > { %s197_s30 = scalar_lea.vmem %s3361_s0, %s2268_s27  ;;  %s1957_s10 = sshll.u32 %s188_s8, 4  ;;  %s3311_s10 = int_to_ptr.vmem [resolvable:$true] %s1957_s10 }
  0x1a   : > { %v2496_v2 = vld [vmem:[%s197_s30 + $0x38] sm:$0xff]  ;;  %v2498_v3 = vld [vmem:[%s197_s30 + $0x30] sm:$0xff]  ;;  %v2500_v4 = vld [vmem:[%s197_s30 + $0x28] sm:$0xff]  ;;  %s3316_s15 = scalar_lea.sflag [#allocation3], %s186_s6  ;;  %s2329_s21 = scalar_lea.vmem %s3311_s10, 1024 }
  0x1b   : > { %274 = vmatprep.subr.mxu0 %v2496_v2  ;;  %v2503_v5 = vld [vmem:[%s197_s30 + $0x20] sm:$0xff]  ;;  %v2506_v6 = vld [vmem:[%s197_s30 + $0x18] sm:$0xff]  ;;  %v2509_v7 = vld [vmem:[%s197_s30 + $0x10] sm:$0xff]  ;;  %p2330_p12 = scmp.ne.s32.totalorder %s3311_s10, %s2329_s21  ;;  %s2409_s23 = smov [#allocation2]  }
  0x1c   : > { %275 = vmatpush1.msra.mxu0 %v2498_v3  ;;  %v2512_v8 = vld [vmem:[%s197_s30 + $0x8] sm:$0xff]  ;;  %v2515_v9 = vld [vmem:[%s197_s30] sm:$0xff]  ;;  %s2333_s26 = sshll.u32 %s2409_s23, 4  ;;  %s2334_s26 = int_to_ptr.vmem [resolvable:$false] %s2333_s26 }
  0x1d   : > { %276 = vmatprep.subr.mxu0 %v2500_v4  ;;  %p2331_p13 = pnand %p2330_p12, %p2472_p4  ;;  %s2335_s27 = scalar_lea.vmem %s2334_s26, 2048 }
  0x1e   : > { %277 = vmatpush1.msra.mxu0 %v2503_v5  ;;  %p2336_p1 = scmp.lt.s32.totalorder %s3311_s10, %s2334_s26  ;;  %p2337_p2 = scmp.lt.s32.totalorder %s2335_s27, %s2329_s21 }
  0x1f   : > { %278 = vmatprep.subr.mxu0 %v2506_v6  ;;  %p2332_p0 = pneg %p2331_p13 }
  0x20   : > { %279 = vmatpush1.msra.mxu0 %v2509_v7  ;;  %p2338_p3 = por %p2337_p2, %p2336_p1 }
  0x21   : > { %280 = vmatprep.subr.mxu0 %v2512_v8 }
  0x22   : > { %281 = vmatpush1.msra.mxu0 %v2515_v9  ;;  %p2339_p5 = pnand %p2338_p3, %p2332_p0 }
  0x23   : > { %2044 = vmatmul.mubr.msk.f32.vlgmr.msra.gmra.mxu0 %vm225_vm0, %v217_v10  ;;  %v2599_v10 = vadd.s32 40, %v2584_v54 }
  0x24   : > { %320 = vmatprep.mubr.f32.mxu0 %v3367_v1 }
  0x27   : > { %2045 = vmatmul.mubr.msk.f32.gmra.mxu0 %vm225_vm0, %v218_v11  ;;  %v2602_v11 = vadd.s32 48, %v2584_v54 }
  0x28   : > { %326 = vmatprep.mubr.f32.mxu0 %v3367_v1 }
  0x2b   : > { %2046 = vmatmul.mubr.msk.f32.gmra.mxu0 %vm225_vm0, %v219_v12 }
  0x2c   : > { %332 = vmatprep.mubr.f32.mxu0 %v3367_v1 }
  0x2f   : > { %2047 = vmatmul.mubr.msk.f32.gmra.mxu0 %vm225_vm0, %v220_v13  ;;  %v2605_v13 = vadd.s32 56, %v2584_v54 }
  0x30   : > { %338 = vmatprep.mubr.f32.mxu0 %v3367_v1 }
  0x33   : > { %2048 = vmatmul.mubr.msk.f32.gmra.mxu0 %vm225_vm0, %v221_v14 }
  0x34   : > { %344 = vmatprep.mubr.f32.mxu0 %v3367_v1 }
  0x37   : > { %2049 = vmatmul.mubr.msk.f32.gmra.mxu0 %vm225_vm0, %v222_v15 }
  0x38   : > { %350 = vmatprep.mubr.f32.mxu0 %v3367_v1 }
  0x3b   : > { %2050 = vmatmul.mubr.msk.f32.gmra.mxu0 %vm225_vm0, %v223_v16 }
  0x3c   : > { %356 = vmatprep.mubr.f32.mxu0 %v3367_v1 }
  0x3f   : > { %2051 = vmatmul.mubr.msk.f32.gmra.mxu0 %vm225_vm0, %v224_v17 }
  0x40   : > { %1032 = vmatprep.mubr.f32.mxu0 %v3367_v1 }
  0xe3   : > { %v316_v18 = vpop.f32.mrf.mxu0 }
  0xe5   : > { %v2560_v19 = vpop.f32.mrf.mxu0 }
  0xe7   : > { %v322_v20 = vpop.f32.mrf.mxu0 }
  0xe9   : > { %v2562_v21 = vpop.f32.mrf.mxu0 }
  0xeb   : > { %v328_v22 = vpop.f32.mrf.mxu0 }
  0xec   : > { %v363_v31 = vmin.f32 %v316_v18, %v328_v22 }
  0xed   : > { %v2564_v23 = vpop.f32.mrf.mxu0 }
  0xee   : > { %v376_v34 = vmin.f32 %v2560_v19, %v2564_v23 }
  0xef   : > { %v334_v24 = vpop.f32.mrf.mxu0 }
  0xf0   : > { %v364_v32 = vmin.f32 %v322_v20, %v334_v24 }
  0xf1   : > { %v2566_v25 = vpop.f32.mrf.mxu0 }
  0xf2   : > { %v377_v35 = vmin.f32 %v2562_v21, %v2566_v25 }
  0xf3   : > { %v340_v26 = vpop.f32.mrf.mxu0 }
  0xf4   : > { %v365_v36 = vmin.f32 %v363_v31, %v340_v26 }
  0xf5   : > { %v2568_v27 = vpop.f32.mrf.mxu0 }
  0xf6   : > { %v378_v39 = vmin.f32 %v376_v34, %v2568_v27 }
  0xf7   : > { %v346_v28 = vpop.f32.mrf.mxu0 }
  0xf8   : > { %v366_v37 = vmin.f32 %v364_v32, %v346_v28 }
  0xf9   : > { %v2570_v29 = vpop.f32.mrf.mxu0 }
  0xfa   : > { %v379_v40 = vmin.f32 %v377_v35, %v2570_v29 }
  0xfb   : > { %v352_v30 = vpop.f32.mrf.mxu0 }
  0xfc   : > { %v367_v41 = vmin.f32 %v365_v36, %v352_v30 }
  0xfd   : > { %v2572_v33 = vpop.f32.mrf.mxu0 }
  0xfe   : > { %v380_v44 = vmin.f32 %v378_v39, %v2572_v33 }
  0xff   : > { %v358_v38 = vpop.f32.mrf.mxu0 }
 0x100   : > { %v368_v42 = vmin.f32 %v366_v37, %v358_v38 }
 0x101   : > { %v2580_v43 = vpop.f32.mrf.mxu0 }
 0x102   : > { %v369_v45 = vmin.f32 %v367_v41, %v368_v42  ;;  %v381_v46 = vmin.f32 %v379_v40, %v2580_v43 }
 0x104   : > { %v370_v47 = vrot.slane %v369_v45, 4  ;;  %v382_v48 = vmin.f32 %v380_v44, %v381_v46 }
 0x106   : > { %v371_v50 = vmin.f32 %v369_v45, %v370_v47  ;;  %v383_v51 = vrot.slane %v382_v48, 4 }
 0x108   : > { %v372_v52 = vrot.slane %v371_v50, 2  ;;  %v384_v53 = vmin.f32 %v382_v48, %v383_v51 }
 0x10a   : > { %v373_v55 = vmin.f32 %v371_v50, %v372_v52  ;;  %v385_v56 = vrot.slane %v384_v53, 2 }
 0x10c   : > { %v374_v57 = vrot.slane %v373_v55, 1  ;;  %v386_v58 = vmin.f32 %v384_v53, %v385_v56 }
 0x10e   : > { %v375_v62 = vmin.f32 %v373_v55, %v374_v57  ;;  %v387_v12 = vrot.slane %v386_v58, 1 }
 0x110   : > { %vm389_vm1 = vcmp.eq.f32.partialorder %v316_v18, %v375_v62  ;;  %vm391_vm2 = vcmp.eq.f32.partialorder %v322_v20, %v375_v62  ;;  %vm393_vm3 = vcmp.eq.f32.partialorder %v328_v22, %v375_v62  ;;  %vm395_vm4 = vcmp.eq.f32.partialorder %v334_v24, %v375_v62 }
 0x111   : > { %vm397_vm5 = vcmp.eq.f32.partialorder %v340_v26, %v375_v62  ;;  %vm399_vm6 = vcmp.eq.f32.partialorder %v346_v28, %v375_v62  ;;  %vm401_vm7 = vcmp.eq.f32.partialorder %v352_v30, %v375_v62  ;;  %v405_v14 = vsel %vm389_vm1, %v2584_v54, 64 }
 0x112   : > { %v407_v15 = vsel %vm391_vm2, %v2587_v59, 64  ;;  %v409_v16 = vsel %vm393_vm3, %v2590_v60, 64  ;;  %v411_v17 = vsel %vm395_vm4, %v2593_v61, 64  ;;  %vm403_vm8 = vcmp.eq.f32.partialorder %v358_v38, %v375_v62  ;;  %v516_v62 = vld [vmem:[%s3363_s2 + $0x8] sm:$0xff] }
 0x113   : > { %v413_v18 = vsel %vm397_vm5, %v2596_v63, 64  ;;  %vm421_vm9 = vcmp.lt.s32.totalorder %v405_v14, %v409_v16  ;;  %vm423_vm10 = vcmp.lt.s32.totalorder %v407_v15, %v411_v17  ;;  %v388_v20 = vmin.f32 %v386_v58, %v387_v12  ;;  %v515_v58 = vld [vmem:[%s3363_s2] sm:$0xff]  ;;  %v517_v12 = vld [vmem:[%s3363_s2 + $0x10] sm:$0xff] }
 0x114   : > { %v415_v22 = vsel %vm399_vm6, %v2599_v10, 64  ;;  %v417_v24 = vsel %vm401_vm7, %v2602_v11, 64  ;;  %v422_v26 = vsel %vm421_vm9, %v405_v14, %v409_v16  ;;  %v424_v28 = vsel %vm423_vm10, %v407_v15, %v411_v17  ;;  %v518_v14 = vld [vmem:[%s3363_s2 + $0x18] sm:$0xff]  ;;  %v519_v15 = vld [vmem:[%s3363_s2 + $0x20] sm:$0xff] }
 0x115   : > { %v419_v30 = vsel %vm403_vm8, %v2605_v13, 64  ;;  %vm425_vm11 = vcmp.lt.s32.totalorder %v422_v26, %v413_v18  ;;  %vm427_vm12 = vcmp.lt.s32.totalorder %v424_v28, %v415_v22  ;;  %vm390_vm13 = vcmp.eq.f32.partialorder %v2560_v19, %v388_v20 }
 0x116   : > { %v426_v31 = vsel %vm425_vm11, %v422_v26, %v413_v18  ;;  %v428_v32 = vsel %vm427_vm12, %v424_v28, %v415_v22  ;;  %vm392_vm14 = vcmp.eq.f32.partialorder %v2562_v21, %v388_v20  ;;  %vm394_vm15 = vcmp.eq.f32.partialorder %v2564_v23, %v388_v20 }
 0x117   : > { %vm429_vm1 = vcmp.lt.s32.totalorder %v426_v31, %v417_v24  ;;  %vm431_vm2 = vcmp.lt.s32.totalorder %v428_v32, %v419_v30  ;;  %vm396_vm3 = vcmp.eq.f32.partialorder %v2566_v25, %v388_v20  ;;  %vm398_vm4 = vcmp.eq.f32.partialorder %v2568_v27, %v388_v20 }
 0x118   : > { %v430_v34 = vsel %vm429_vm1, %v426_v31, %v417_v24  ;;  %v432_v35 = vsel %vm431_vm2, %v428_v32, %v419_v30  ;;  %v406_v36 = vsel %vm390_vm13, %v2584_v54, 64  ;;  %v408_v37 = vsel %vm392_vm14, %v2587_v59, 64 }
 0x119   : > { %vm433_vm5 = vcmp.lt.s32.totalorder %v430_v34, %v432_v35  ;;  %v410_v19 = vsel %vm394_vm15, %v2590_v60, 64  ;;  %vm400_vm6 = vcmp.eq.f32.partialorder %v2570_v29, %v388_v20  ;;  %v412_v21 = vsel %vm396_vm3, %v2593_v61, 64 }
 0x11a   : > { %v434_v38 = vsel %vm433_vm5, %v430_v34, %v432_v35  ;;  %vm402_vm7 = vcmp.eq.f32.partialorder %v2572_v33, %v388_v20  ;;  %vm444_vm8 = vcmp.lt.s32.totalorder %v406_v36, %v410_v19  ;;  %vm404_vm9 = vcmp.eq.f32.partialorder %v2580_v43, %v388_v20 }
 0x11b   : > { %v435_v23 = vrot.slane %v434_v38, 4  ;;  %v414_v25 = vsel %vm398_vm4, %v2596_v63, 64  ;;  %v445_v27 = vsel %vm444_vm8, %v406_v36, %v410_v19  ;;  %vm446_vm10 = vcmp.lt.s32.totalorder %v408_v37, %v412_v21 }
 0x11c   : > { %v416_v39 = vsel %vm400_vm6, %v2599_v10, 64  ;;  %v447_v40 = vsel %vm446_vm10, %v408_v37, %v412_v21  ;;  %vm448_vm12 = vcmp.lt.s32.totalorder %v445_v27, %v414_v25  ;;  %v418_v29 = vsel %vm402_vm7, %v2602_v11, 64  ;;  %v2094_v21 = vld [vmem:[%s3362_s1 + $0x68] sm:$0xff] }
 0x11d   : > { %vm436_vm11 = vcmp.lt.s32.totalorder %v434_v38, %v435_v23  ;;  %v449_v42 = vsel %vm448_vm12, %v445_v27, %v414_v25  ;;  %vm450_vm13 = vcmp.lt.s32.totalorder %v447_v40, %v416_v39  ;;  %v420_v33 = vsel %vm404_vm9, %v2605_v13, 64  ;;  %v2096_v25 = vld [vmem:[%s3362_s1 + $0x78] sm:$0xff] }
 0x11e   : > { %v437_v41 = vsel %vm436_vm11, %v434_v38, %v435_v23  ;;  %v451_v45 = vsel %vm450_vm13, %v447_v40, %v416_v39  ;;  %vm452_vm14 = vcmp.lt.s32.totalorder %v449_v42, %v418_v29  ;;  %v2093_v38 = vld [vmem:[%s3362_s1 + $0x60] sm:$0xff]  ;;  %v2095_v23 = vld [vmem:[%s3362_s1 + $0x70] sm:$0xff] }
 0x11f   : > { %v438_v44 = vrot.slane %v437_v41, 2  ;;  %v453_v43 = vsel %vm452_vm14, %v449_v42, %v418_v29  ;;  %vm454_vm15 = vcmp.lt.s32.totalorder %v451_v45, %v420_v33 }
 0x120   : > { %v455_v46 = vsel %vm454_vm15, %v451_v45, %v420_v33 }
 0x121   : > { %vm439_vm1 = vcmp.lt.s32.totalorder %v437_v41, %v438_v44  ;;  %vm456_vm2 = vcmp.lt.s32.totalorder %v453_v43, %v455_v46 }
 0x122   : > { %v457_v47 = vsel %vm456_vm2, %v453_v43, %v455_v46  ;;  %v440_v48 = vsel %vm439_vm1, %v437_v41, %v438_v44 }
 0x123   : > { %v458_v49 = vrot.slane %v457_v47, 4  ;;  %v441_v50 = vrot.slane %v440_v48, 1 }
 0x125   : > { %vm459_vm3 = vcmp.lt.s32.totalorder %v457_v47, %v458_v49  ;;  %vm442_vm5 = vcmp.lt.s32.totalorder %v440_v48, %v441_v50 }
 0x126   : > { %v460_v51 = vsel %vm459_vm3, %v457_v47, %v458_v49  ;;  %v443_v56 = vsel %vm442_vm5, %v440_v48, %v441_v50 }
 0x127   : > { %v461_v52 = vrot.slane %v460_v51, 2  ;;  %vm481_vm8 = vcmp.eq.s32.totalorder %v2605_v13, %v443_v56  ;;  %vm479_vm10 = vcmp.eq.s32.totalorder %v2602_v11, %v443_v56  ;;  %vm477_vm12 = vcmp.eq.s32.totalorder %v2599_v10, %v443_v56 }
 0x128   : > { %vm475_vm14 = vcmp.eq.s32.totalorder %v2596_v63, %v443_v56  ;;  %vm473_vm1 = vcmp.eq.s32.totalorder %v2593_v61, %v443_v56  ;;  %vm471_vm3 = vcmp.eq.s32.totalorder %v2590_v60, %v443_v56  ;;  %vm469_vm5 = vcmp.eq.s32.totalorder %v2587_v59, %v443_v56 }
 0x129   : > { %vm462_vm4 = vcmp.lt.s32.totalorder %v460_v51, %v461_v52 }
 0x12a   : > { %v463_v53 = vsel %vm462_vm4, %v460_v51, %v461_v52 }
 0x12b   : > { %v464_v55 = vrot.slane %v463_v53, 1 }
 0x12d   : > { %vm465_vm6 = vcmp.lt.s32.totalorder %v463_v53, %v464_v55 }
 0x12e   : > { %v466_v57 = vsel %vm465_vm6, %v463_v53, %v464_v55 }
 0x12f   : > { %vm482_vm7 = vcmp.eq.s32.totalorder %v2605_v13, %v466_v57  ;;  %vm480_vm9 = vcmp.eq.s32.totalorder %v2602_v11, %v466_v57  ;;  %vm478_vm11 = vcmp.eq.s32.totalorder %v2599_v10, %v466_v57  ;;  %vm476_vm13 = vcmp.eq.s32.totalorder %v2596_v63, %v466_v57 }
 0x130   : > { %2068 = vmatprep.subr.msk.mxu1 %vm482_vm7, %v3369_v0  ;;  %vm474_vm15 = vcmp.eq.s32.totalorder %v2593_v61, %v466_v57  ;;  %vm472_vm2 = vcmp.eq.s32.totalorder %v2590_v60, %v466_v57  ;;  %vm470_vm4 = vcmp.eq.s32.totalorder %v2587_v59, %v466_v57  ;;  %vm468_vm6 = vcmp.eq.s32.totalorder %v2584_v54, %v466_v57 }
 0x131   : > { %2069 = vmatpush1.msk.msra.mxu1 %vm481_vm8, %v3369_v0  ;;  %vm520_vm7 = vcmask 523264   ;;  %vm467_vm8 = vcmp.eq.s32.totalorder %v2584_v54, %v443_v56 }
 0x132   : > { %2070 = vmatprep.subr.msk.mxu1 %vm480_vm9, %v3369_v0 }
 0x133   : > { %2071 = vmatpush1.msk.msra.mxu1 %vm479_vm10, %v3369_v0 }
 0x134   : > { %2072 = vmatprep.subr.msk.mxu1 %vm478_vm11, %v3369_v0 }
 0x135   : > { %2073 = vmatpush1.msk.msra.mxu1 %vm477_vm12, %v3369_v0 }
 0x136   : > { %2074 = vmatprep.subr.msk.mxu1 %vm476_vm13, %v3369_v0 }
 0x137   : > { %2075 = vmatpush1.msk.msra.mxu1 %vm475_vm14, %v3369_v0 }
 0x138   : > { %2076 = vmatprep.subr.msk.mxu1 %vm474_vm15, %v3369_v0 }
 0x139   : > { %2077 = vmatpush1.msk.msra.mxu1 %vm473_vm1, %v3369_v0 }
 0x13a   : > { %2078 = vmatprep.subr.msk.mxu1 %vm472_vm2, %v3369_v0 }
 0x13b   : > { %2079 = vmatpush1.msk.msra.mxu1 %vm471_vm3, %v3369_v0 }
 0x13c   : > { %2080 = vmatprep.subr.msk.mxu1 %vm470_vm4, %v3369_v0 }
 0x13d   : > { %2081 = vmatpush1.msk.msra.mxu1 %vm469_vm5, %v3369_v0 }
 0x13e   : > { %2082 = vmatprep.subr.msk.mxu1 %vm468_vm6, %v3369_v0 }
 0x13f   : > { %2083 = vmatpush1.msk.msra.mxu1 %vm467_vm8, %v3369_v0 }
 0x140   : > { %2084 = vmatmul.mubr.msk.f32.vlgmr.msra.gmra.mxu1 %vm520_vm7, %v515_v58 }
 0x141   : > { %606 = vmatprep.mubr.f32.mxu1 %v3367_v1 }
 0x144   : > { %2085 = vmatmul.mubr.msk.f32.gmra.mxu1 %vm520_vm7, %v516_v62 }
 0x145   : > { %612 = vmatprep.mubr.f32.mxu1 %v3367_v1 }
 0x148   : > { %2086 = vmatmul.mubr.msk.f32.gmra.mxu1 %vm520_vm7, %v517_v12 }
 0x149   : > { %618 = vmatprep.mubr.f32.mxu1 %v3367_v1 }
 0x14c   : > { %2087 = vmatmul.mubr.msk.f32.gmra.mxu1 %vm520_vm7, %v518_v14 }
 0x14d   : > { %624 = vmatprep.mubr.f32.mxu1 %v3367_v1 }
 0x150   : > { %2088 = vmatmul.mubr.msk.f32.gmra.mxu1 %vm520_vm7, %v519_v15 }
 0x151   : > { %746 = vmatprep.mubr.f32.mxu1 %v3367_v1 }
 0x200   : > { %v2688_v16 = vpop.f32.mrf.mxu1 }
 0x202   : > { %v2690_v17 = vpop.f32.mrf.mxu1 }
 0x204   : > { %v2692_v18 = vpop.f32.mrf.mxu1 }
 0x206   : > { %v2694_v20 = vpop.f32.mrf.mxu1 }
 0x207   : > { %v2734_v19 = vsub.f32 %v2506_v6, %v2694_v20  ;;  %v2089_v6 = vld [vmem:[%s3362_s1 + $0x40] sm:$0xff] }
 0x208   : > { %v2696_v22 = vpop.f32.mrf.mxu1 }
 0x20a   : > { %v2698_v24 = vpop.f32.mrf.mxu1 }
 0x20b   : > { %v2724_v37 = vsub.f32 %v2500_v4, %v2698_v24  ;;  %v2744_v4 = vsub.f32 %v2512_v8, %v2690_v17  ;;  %v2091_v8 = vld [vmem:[%s3362_s1 + $0x50] sm:$0xff] }
 0x20c   : > { %v2700_v26 = vpop.f32.mrf.mxu1 }
 0x20d   : > { %v2718_v36 = vsub.f32 %v2498_v3, %v2700_v26  ;;  %v2739_v3 = vsub.f32 %v2509_v7, %v2692_v18  ;;  %v2090_v7 = vld [vmem:[%s3362_s1 + $0x48] sm:$0xff] }
 0x20e   : > { %v2702_v28 = vpop.f32.mrf.mxu1 }
 0x20f   : > { %v2712_v35 = vsub.f32 %v2496_v2, %v2702_v28  ;;  %v2729_v2 = vsub.f32 %v2503_v5, %v2696_v22  ;;  %v2749_v5 = vsub.f32 %v2515_v9, %v2688_v16  ;;  %v2092_v9 = vld [vmem:[%s3362_s1 + $0x58] sm:$0xff] }
 0x210   : > { %v2704_v30 = vpop.f32.mrf.mxu1 }
 0x211   : > { %v3365_v34 = vsub.f32 1.0, %v2704_v30 }
 0x212   : > { %v2706_v31 = vpop.f32.mrf.mxu1 }
 0x213   : > { %v3366_v32 = vsub.f32 1.0, %v2706_v31 }
 0x215   : > { %704 = vmatprep.subr.mxu1 %v3366_v32 }
 0x216   : > { %705 = vmatpush1.msra.mxu1 %v3365_v34 }
 0x217   : > { %706 = vmatprep.subr.mxu1 %v2712_v35 }
 0x218   : > { %707 = vmatpush1.msra.mxu1 %v2718_v36 }
 0x219   : > { %708 = vmatprep.subr.mxu1 %v2724_v37 }
 0x21a   : > { %709 = vmatpush1.msra.mxu1 %v2729_v2 }
 0x21b   : > { %710 = vmatprep.subr.mxu1 %v2734_v19 }
 0x21c   : > { %711 = vmatpush1.msra.mxu1 %v2739_v3 }
 0x21d   : > { %712 = vmatprep.subr.mxu1 %v2744_v4 }
 0x21e   : > { %713 = vmatpush1.msra.mxu1 %v2749_v5 }
 0x21f   : > { %2097 = vmatmul.mubr.msk.f32.vlgmr.msra.gmra.mxu1 %vm225_vm0, %v2089_v6 }
 0x220   : > { %752 = vmatprep.mubr.f32.mxu1 %v3367_v1 }
 0x223   : > { %2098 = vmatmul.mubr.msk.f32.gmra.mxu1 %vm225_vm0, %v2090_v7 }
 0x224   : > { %758 = vmatprep.mubr.f32.mxu1 %v3367_v1 }
 0x227   : > { %2099 = vmatmul.mubr.msk.f32.gmra.mxu1 %vm225_vm0, %v2091_v8 }
 0x228   : > { %764 = vmatprep.mubr.f32.mxu1 %v3367_v1 }
 0x22b   : > { %2100 = vmatmul.mubr.msk.f32.gmra.mxu1 %vm225_vm0, %v2092_v9 }
 0x22c   : > { %770 = vmatprep.mubr.f32.mxu1 %v3367_v1 }
 0x22f   : > { %2101 = vmatmul.mubr.msk.f32.gmra.mxu1 %vm225_vm0, %v2093_v38 }
 0x230   : > { %776 = vmatprep.mubr.f32.mxu1 %v3367_v1 }
 0x233   : > { %2102 = vmatmul.mubr.msk.f32.gmra.mxu1 %vm225_vm0, %v2094_v21 }
 0x234   : > { %782 = vmatprep.mubr.f32.mxu1 %v3367_v1 }
 0x237   : > { %2103 = vmatmul.mubr.msk.f32.gmra.mxu1 %vm225_vm0, %v2095_v23 }
 0x238   : > { %788 = vmatprep.mubr.f32.mxu1 %v3367_v1 }
 0x23b   : > { %2104 = vmatmul.mubr.msk.f32.gmra.mxu1 %vm225_vm0, %v2096_v25 }
 0x23c   : > { %1464 = vmatprep.mubr.f32.mxu1 %v3367_v1 }
 0x2df   : > { %v748_v27 = vpop.f32.mrf.mxu1 }
 0x2e1   : > { %v2794_v39 = vpop.f32.mrf.mxu1 }
 0x2e3   : > { %v754_v40 = vpop.f32.mrf.mxu1 }
 0x2e5   : > { %v2796_v41 = vpop.f32.mrf.mxu1 }
 0x2e7   : > { %v760_v29 = vpop.f32.mrf.mxu1 }
 0x2e8   : > { %v795_v49 = vmin.f32 %v748_v27, %v760_v29 }
 0x2e9   : > { %v2798_v42 = vpop.f32.mrf.mxu1 }
 0x2ea   : > { %v808_v52 = vmin.f32 %v2794_v39, %v2798_v42 }
 0x2eb   : > { %v766_v44 = vpop.f32.mrf.mxu1 }
 0x2ec   : > { %v796_v50 = vmin.f32 %v754_v40, %v766_v44 }
 0x2ed   : > { %v2800_v33 = vpop.f32.mrf.mxu1 }
 0x2ee   : > { %v809_v53 = vmin.f32 %v2796_v41, %v2800_v33 }
 0x2ef   : > { %v772_v45 = vpop.f32.mrf.mxu1 }
 0x2f0   : > { %v797_v55 = vmin.f32 %v795_v49, %v772_v45 }
 0x2f1   : > { %v2802_v43 = vpop.f32.mrf.mxu1 }
 0x2f2   : > { %v810_v58 = vmin.f32 %v808_v52, %v2802_v43 }
 0x2f3   : > { %v778_v46 = vpop.f32.mrf.mxu1 }
 0x2f4   : > { %v798_v56 = vmin.f32 %v796_v50, %v778_v46 }
 0x2f5   : > { %v2804_v47 = vpop.f32.mrf.mxu1 }
 0x2f6   : > { %v811_v62 = vmin.f32 %v809_v53, %v2804_v47 }
 0x2f7   : > { %v784_v48 = vpop.f32.mrf.mxu1 }
 0x2f8   : > { %v799_v12 = vmin.f32 %v797_v55, %v784_v48 }
 0x2f9   : > { %v2806_v51 = vpop.f32.mrf.mxu1 }
 0x2fa   : > { %v812_v6 = vmin.f32 %v810_v58, %v2806_v51 }
 0x2fb   : > { %v790_v57 = vpop.f32.mrf.mxu1 }
 0x2fc   : > { %v800_v14 = vmin.f32 %v798_v56, %v790_v57 }
 0x2fd   : > { %v2814_v15 = vpop.f32.mrf.mxu1 }
 0x2fe   : > { %v801_v7 = vmin.f32 %v799_v12, %v800_v14  ;;  %v813_v8 = vmin.f32 %v811_v62, %v2814_v15 }
 0x300   : > { %v802_v9 = vrot.slane %v801_v7, 4  ;;  %v814_v38 = vmin.f32 %v812_v6, %v813_v8 }
 0x302   : > { %v803_v21 = vmin.f32 %v801_v7, %v802_v9  ;;  %v815_v23 = vrot.slane %v814_v38, 4 }
 0x304   : > { %v804_v25 = vrot.slane %v803_v21, 2  ;;  %v816_v49 = vmin.f32 %v814_v38, %v815_v23 }
 0x306   : > { %v805_v50 = vmin.f32 %v803_v21, %v804_v25  ;;  %v817_v34 = vrot.slane %v816_v49, 2 }
 0x308   : > { %v806_v52 = vrot.slane %v805_v50, 1  ;;  %v818_v32 = vmin.f32 %v816_v49, %v817_v34 }
 0x30a   : > { %v807_v53 = vmin.f32 %v805_v50, %v806_v52  ;;  %v819_v55 = vrot.slane %v818_v32, 1 }
 0x30c   : > { %vm821_vm9 = vcmp.eq.f32.partialorder %v748_v27, %v807_v53  ;;  %vm823_vm10 = vcmp.eq.f32.partialorder %v754_v40, %v807_v53  ;;  %vm825_vm11 = vcmp.eq.f32.partialorder %v760_v29, %v807_v53  ;;  %vm827_vm12 = vcmp.eq.f32.partialorder %v766_v44, %v807_v53 }
 0x30d   : > { %vm829_vm13 = vcmp.eq.f32.partialorder %v772_v45, %v807_v53  ;;  %vm831_vm14 = vcmp.eq.f32.partialorder %v778_v46, %v807_v53  ;;  %vm833_vm15 = vcmp.eq.f32.partialorder %v784_v48, %v807_v53  ;;  %v837_v56 = vsel %vm821_vm9, %v2584_v54, 64 }
 0x30e   : > { %v839_v58 = vsel %vm823_vm10, %v2587_v59, 64  ;;  %v841_v62 = vsel %vm825_vm11, %v2590_v60, 64  ;;  %v843_v12 = vsel %vm827_vm12, %v2593_v61, 64  ;;  %vm835_vm1 = vcmp.eq.f32.partialorder %v790_v57, %v807_v53 }
 0x30f   : > { %v845_v34 = vsel %vm829_vm13, %v2596_v63, 64  ;;  %vm853_vm2 = vcmp.lt.s32.totalorder %v837_v56, %v841_v62  ;;  %vm855_vm3 = vcmp.lt.s32.totalorder %v839_v58, %v843_v12  ;;  %v820_v27 = vmin.f32 %v818_v32, %v819_v55 }
 0x310   : > { %v847_v40 = vsel %vm831_vm14, %v2599_v10, 64  ;;  %v849_v29 = vsel %vm833_vm15, %v2602_v11, 64  ;;  %v854_v44 = vsel %vm853_vm2, %v837_v56, %v841_v62  ;;  %v856_v45 = vsel %vm855_vm3, %v839_v58, %v843_v12 }
 0x311   : > { %v851_v46 = vsel %vm835_vm1, %v2605_v13, 64  ;;  %vm857_vm4 = vcmp.lt.s32.totalorder %v854_v44, %v845_v34  ;;  %vm859_vm5 = vcmp.lt.s32.totalorder %v856_v45, %v847_v40  ;;  %vm822_vm6 = vcmp.eq.f32.partialorder %v2794_v39, %v820_v27 }
 0x312   : > { %v858_v48 = vsel %vm857_vm4, %v854_v44, %v845_v34  ;;  %v860_v14 = vsel %vm859_vm5, %v856_v45, %v847_v40  ;;  %vm824_vm8 = vcmp.eq.f32.partialorder %v2796_v41, %v820_v27  ;;  %vm826_vm9 = vcmp.eq.f32.partialorder %v2798_v42, %v820_v27  ;;  %v2122_v44 = vld [vmem:[%s3363_s2 + $0x30] sm:$0xff]  ;;  %v2123_v45 = vld [vmem:[%s3363_s2 + $0x38] sm:$0xff] }
 0x313   : > { %vm861_vm10 = vcmp.lt.s32.totalorder %v858_v48, %v849_v29  ;;  %vm863_vm11 = vcmp.lt.s32.totalorder %v860_v14, %v851_v46  ;;  %vm828_vm12 = vcmp.eq.f32.partialorder %v2800_v33, %v820_v27  ;;  %vm830_vm13 = vcmp.eq.f32.partialorder %v2802_v43, %v820_v27 }
 0x314   : > { %v862_v32 = vsel %vm861_vm10, %v858_v48, %v849_v29  ;;  %v864_v57 = vsel %vm863_vm11, %v860_v14, %v851_v46  ;;  %v838_v6 = vsel %vm822_vm6, %v2584_v54, 64  ;;  %v840_v7 = vsel %vm824_vm8, %v2587_v59, 64  ;;  %v2121_v29 = vld [vmem:[%s3363_s2 + $0x28] sm:$0xff]  ;;  %v2124_v46 = vld [vmem:[%s3363_s2 + $0x40] sm:$0xff] }
 0x315   : > { %vm865_vm14 = vcmp.lt.s32.totalorder %v862_v32, %v864_v57  ;;  %v842_v39 = vsel %vm826_vm9, %v2590_v60, 64  ;;  %vm832_vm15 = vcmp.eq.f32.partialorder %v2804_v47, %v820_v27  ;;  %v844_v41 = vsel %vm828_vm12, %v2593_v61, 64  ;;  %v2125_v48 = vld [vmem:[%s3363_s2 + $0x48] sm:$0xff] }
 0x316   : > { %v866_v8 = vsel %vm865_vm14, %v862_v32, %v864_v57  ;;  %vm834_vm1 = vcmp.eq.f32.partialorder %v2806_v51, %v820_v27  ;;  %vm876_vm2 = vcmp.lt.s32.totalorder %v838_v6, %v842_v39  ;;  %vm836_vm3 = vcmp.eq.f32.partialorder %v2814_v15, %v820_v27 }
 0x317   : > { %v867_v42 = vrot.slane %v866_v8, 4  ;;  %v846_v33 = vsel %vm830_vm13, %v2596_v63, 64  ;;  %v877_v43 = vsel %vm876_vm2, %v838_v6, %v842_v39  ;;  %vm878_vm4 = vcmp.lt.s32.totalorder %v840_v7, %v844_v41 }
 0x318   : > { %v848_v9 = vsel %vm832_vm15, %v2599_v10, 64  ;;  %v879_v38 = vsel %vm878_vm4, %v840_v7, %v844_v41  ;;  %vm880_vm6 = vcmp.lt.s32.totalorder %v877_v43, %v846_v33  ;;  %v850_v47 = vsel %vm834_vm1, %v2602_v11, 64 }
 0x319   : > { %vm868_vm5 = vcmp.lt.s32.totalorder %v866_v8, %v867_v42  ;;  %v881_v23 = vsel %vm880_vm6, %v877_v43, %v846_v33  ;;  %vm882_vm8 = vcmp.lt.s32.totalorder %v879_v38, %v848_v9  ;;  %v852_v51 = vsel %vm836_vm3, %v2605_v13, 64 }
 0x31a   : > { %v869_v21 = vsel %vm868_vm5, %v866_v8, %v867_v42  ;;  %v883_v49 = vsel %vm882_vm8, %v879_v38, %v848_v9  ;;  %vm884_vm9 = vcmp.lt.s32.totalorder %v881_v23, %v850_v47  ;;  %v3379_v43 = vsub.f32 1.0, %v2706_v31 }
 0x31b   : > { %v870_v25 = vrot.slane %v869_v21, 2  ;;  %v885_v15 = vsel %vm884_vm9, %v881_v23, %v850_v47  ;;  %vm886_vm10 = vcmp.lt.s32.totalorder %v883_v49, %v852_v51  ;;  %v3380_v38 = vsub.f32 1.0, %v2704_v30 }
 0x31c   : > { %v887_v50 = vsel %vm886_vm10, %v883_v49, %v852_v51  ;;  %v2152_v51 = vld [vmem:[%s3362_s1 + $0xa8] sm:$0xff]  ;;  %v2153_v49 = vld [vmem:[%s3362_s1 + $0xb0] sm:$0xff] }
 0x31d   : > { %vm871_vm11 = vcmp.lt.s32.totalorder %v869_v21, %v870_v25  ;;  %vm888_vm12 = vcmp.lt.s32.totalorder %v885_v15, %v887_v50 }
 0x31e   : > { %v889_v52 = vsel %vm888_vm12, %v885_v15, %v887_v50  ;;  %v872_v53 = vsel %vm871_vm11, %v869_v21, %v870_v25  ;;  %v2151_v25 = vld [vmem:[%s3362_s1 + $0xa0] sm:$0xff]  ;;  %v2154_v15 = vld [vmem:[%s3362_s1 + $0xb8] sm:$0xff] }
 0x31f   : > { %v890_v55 = vrot.slane %v889_v52, 4  ;;  %v873_v56 = vrot.slane %v872_v53, 1 }
 0x321   : > { %vm891_vm13 = vcmp.lt.s32.totalorder %v889_v52, %v890_v55  ;;  %vm874_vm15 = vcmp.lt.s32.totalorder %v872_v53, %v873_v56 }
 0x322   : > { %v892_v58 = vsel %vm891_vm13, %v889_v52, %v890_v55  ;;  %v875_v27 = vsel %vm874_vm15, %v872_v53, %v873_v56 }
 0x323   : > { %v893_v62 = vrot.slane %v892_v58, 2  ;;  %vm913_vm3 = vcmp.eq.s32.totalorder %v2605_v13, %v875_v27  ;;  %vm911_vm5 = vcmp.eq.s32.totalorder %v2602_v11, %v875_v27  ;;  %vm909_vm8 = vcmp.eq.s32.totalorder %v2599_v10, %v875_v27 }
 0x324   : > { %vm907_vm10 = vcmp.eq.s32.totalorder %v2596_v63, %v875_v27  ;;  %vm905_vm12 = vcmp.eq.s32.totalorder %v2593_v61, %v875_v27 }
 0x325   : > { %vm894_vm14 = vcmp.lt.s32.totalorder %v892_v58, %v893_v62 }
 0x326   : > { %v895_v12 = vsel %vm894_vm14, %v892_v58, %v893_v62  ;;  %vm903_vm14 = vcmp.eq.s32.totalorder %v2590_v60, %v875_v27 }
 0x327   : > { %v896_v34 = vrot.slane %v895_v12, 1 }
 0x329   : > { %vm897_vm1 = vcmp.lt.s32.totalorder %v895_v12, %v896_v34 }
 0x32a   : > { %v898_v40 = vsel %vm897_vm1, %v895_v12, %v896_v34  ;;  %vm901_vm1 = vcmp.eq.s32.totalorder %v2587_v59, %v875_v27 }
 0x32b   : > { %vm914_vm2 = vcmp.eq.s32.totalorder %v2605_v13, %v898_v40  ;;  %vm912_vm4 = vcmp.eq.s32.totalorder %v2602_v11, %v898_v40  ;;  %vm910_vm6 = vcmp.eq.s32.totalorder %v2599_v10, %v898_v40  ;;  %vm908_vm9 = vcmp.eq.s32.totalorder %v2596_v63, %v898_v40 }
 0x32c   : > { %2126 = vmatprep.subr.msk.mxu0 %vm914_vm2, %v3369_v0  ;;  %vm906_vm11 = vcmp.eq.s32.totalorder %v2593_v61, %v898_v40  ;;  %vm904_vm13 = vcmp.eq.s32.totalorder %v2590_v60, %v898_v40  ;;  %vm902_vm15 = vcmp.eq.s32.totalorder %v2587_v59, %v898_v40  ;;  %vm900_vm2 = vcmp.eq.s32.totalorder %v2584_v54, %v898_v40 }
 0x32d   : > { %2127 = vmatpush1.msk.msra.mxu0 %vm913_vm3, %v3369_v0  ;;  %vm899_vm3 = vcmp.eq.s32.totalorder %v2584_v54, %v875_v27 }
 0x32e   : > { %2128 = vmatprep.subr.msk.mxu0 %vm912_vm4, %v3369_v0 }
 0x32f   : > { %2129 = vmatpush1.msk.msra.mxu0 %vm911_vm5, %v3369_v0 }
 0x330   : > { %2130 = vmatprep.subr.msk.mxu0 %vm910_vm6, %v3369_v0 }
 0x331   : > { %2131 = vmatpush1.msk.msra.mxu0 %vm909_vm8, %v3369_v0 }
 0x332   : > { %2132 = vmatprep.subr.msk.mxu0 %vm908_vm9, %v3369_v0 }
 0x333   : > { %2133 = vmatpush1.msk.msra.mxu0 %vm907_vm10, %v3369_v0 }
 0x334   : > { %2134 = vmatprep.subr.msk.mxu0 %vm906_vm11, %v3369_v0 }
 0x335   : > { %2135 = vmatpush1.msk.msra.mxu0 %vm905_vm12, %v3369_v0 }
 0x336   : > { %2136 = vmatprep.subr.msk.mxu0 %vm904_vm13, %v3369_v0 }
 0x337   : > { %2137 = vmatpush1.msk.msra.mxu0 %vm903_vm14, %v3369_v0 }
 0x338   : > { %2138 = vmatprep.subr.msk.mxu0 %vm902_vm15, %v3369_v0 }
 0x339   : > { %2139 = vmatpush1.msk.msra.mxu0 %vm901_vm1, %v3369_v0 }
 0x33a   : > { %2140 = vmatprep.subr.msk.mxu0 %vm900_vm2, %v3369_v0 }
 0x33b   : > { %2141 = vmatpush1.msk.msra.mxu0 %vm899_vm3, %v3369_v0 }
 0x33c   : > { %2142 = vmatmul.mubr.msk.f32.vlgmr.msra.gmra.mxu0 %vm520_vm7, %v2121_v29 }
 0x33d   : > { %1038 = vmatprep.mubr.f32.mxu0 %v3367_v1 }
 0x340   : > { %2143 = vmatmul.mubr.msk.f32.gmra.mxu0 %vm520_vm7, %v2122_v44 }
 0x341   : > { %1044 = vmatprep.mubr.f32.mxu0 %v3367_v1 }
 0x344   : > { %2144 = vmatmul.mubr.msk.f32.gmra.mxu0 %vm520_vm7, %v2123_v45 }
 0x345   : > { %1050 = vmatprep.mubr.f32.mxu0 %v3367_v1 }
 0x348   : > { %2145 = vmatmul.mubr.msk.f32.gmra.mxu0 %vm520_vm7, %v2124_v46 }
 0x349   : > { %1056 = vmatprep.mubr.f32.mxu0 %v3367_v1 }
 0x34c   : > { %2146 = vmatmul.mubr.msk.f32.gmra.mxu0 %vm520_vm7, %v2125_v48 }
 0x34d   : > { %1178 = vmatprep.mubr.f32.mxu0 %v3367_v1 }
 0x3fc   : > { %v2899_v14 = vpop.f32.mrf.mxu0 }
 0x3fe   : > { %v2901_v32 = vpop.f32.mrf.mxu0 }
 0x400   : > { %v2903_v57 = vpop.f32.mrf.mxu0 }
 0x402   : > { %v2905_v6 = vpop.f32.mrf.mxu0 }
 0x404   : > { %v2907_v7 = vpop.f32.mrf.mxu0 }
 0x405   : > { %v2940_v30 = vsub.f32 %v2729_v2, %v2907_v7  ;;  %v2960_v2 = vsub.f32 %v2749_v5, %v2899_v14  ;;  %v2150_v5 = vld [vmem:[%s3362_s1 + $0x98] sm:$0xff] }
 0x406   : > { %v2909_v39 = vpop.f32.mrf.mxu0 }
 0x407   : > { %v2935_v31 = vsub.f32 %v2724_v37, %v2909_v39  ;;  %3382 = vst [vmem:[#allocation6_spill] sm:$0xff] %v2940_v30  ;;  %v2955_v37 = vsub.f32 %v2744_v4, %v2901_v32  ;;  %3386 = vst [vmem:[#allocation10_spill] sm:$0xff] %v2960_v2  ;;  %v2149_v4 = vld [vmem:[%s3362_s1 + $0x90] sm:$0xff] }
 0x408   : > { %v2911_v8 = vpop.f32.mrf.mxu0 }
 0x409   : > { %v2930_v23 = vsub.f32 %v2718_v36, %v2911_v8  ;;  %3381 = vst [vmem:[#allocation5_spill] sm:$0xff] %v2935_v31  ;;  %v2950_v36 = vsub.f32 %v2739_v3, %v2903_v57  ;;  %3385 = vst [vmem:[#allocation9_spill] sm:$0xff] %v2955_v37  ;;  %v2148_v3 = vld [vmem:[%s3362_s1 + $0x88] sm:$0xff] }
 0x40a   : > { %v2913_v41 = vpop.f32.mrf.mxu0 }
 0x40b   : > { %v2925_v47 = vsub.f32 %v2712_v35, %v2913_v41  ;;  %v2945_v35 = vsub.f32 %v2734_v19, %v2905_v6  ;;  %3384 = vst [vmem:[#allocation8_spill] sm:$0xff] %v2950_v36  ;;  %v2147_v19 = vld [vmem:[%s3362_s1 + $0x80] sm:$0xff] }
 0x40c   : > { %v1058_v42 = vpop.f32.mrf.mxu0 }
 0x40d   : > { %v2921_v21 = vsub.f32 %v3380_v38, %v1058_v42  ;;  %3383 = vst [vmem:[#allocation7_spill] sm:$0xff] %v2945_v35 }
 0x40e   : > { %v1060_v33 = vpop.f32.mrf.mxu0 }
 0x40f   : > { %v2917_v9 = vsub.f32 %v3379_v43, %v1060_v33 }
 0x411   : > { %1136 = vmatprep.subr.mxu0 %v2917_v9 }
 0x412   : > { %1137 = vmatpush1.msra.mxu0 %v2921_v21 }
 0x413   : > { %1138 = vmatprep.subr.mxu0 %v2925_v47 }
 0x414   : > { %1139 = vmatpush1.msra.mxu0 %v2930_v23 }
 0x415   : > { %1140 = vmatprep.subr.mxu0 %v2935_v31 }
 0x416   : > { %1141 = vmatpush1.msra.mxu0 %v2940_v30 }
 0x417   : > { %1142 = vmatprep.subr.mxu0 %v2945_v35 }
 0x418   : > { %1143 = vmatpush1.msra.mxu0 %v2950_v36 }
 0x419   : > { %1144 = vmatprep.subr.mxu0 %v2955_v37 }
 0x41a   : > { %1145 = vmatpush1.msra.mxu0 %v2960_v2 }
 0x41b   : > { %2155 = vmatmul.mubr.msk.f32.vlgmr.msra.gmra.mxu0 %vm225_vm0, %v2147_v19 }
 0x41c   : > { %1184 = vmatprep.mubr.f32.mxu0 %v3367_v1 }
 0x41f   : > { %2156 = vmatmul.mubr.msk.f32.gmra.mxu0 %vm225_vm0, %v2148_v3 }
 0x420   : > { %1190 = vmatprep.mubr.f32.mxu0 %v3367_v1 }
 0x423   : > { %2157 = vmatmul.mubr.msk.f32.gmra.mxu0 %vm225_vm0, %v2149_v4 }
 0x424   : > { %1196 = vmatprep.mubr.f32.mxu0 %v3367_v1 }
 0x427   : > { %2158 = vmatmul.mubr.msk.f32.gmra.mxu0 %vm225_vm0, %v2150_v5 }
 0x428   : > { %1202 = vmatprep.mubr.f32.mxu0 %v3367_v1 }
 0x42b   : > { %2159 = vmatmul.mubr.msk.f32.gmra.mxu0 %vm225_vm0, %v2151_v25 }
 0x42c   : > { %1208 = vmatprep.mubr.f32.mxu0 %v3367_v1 }
 0x42f   : > { %2160 = vmatmul.mubr.msk.f32.gmra.mxu0 %vm225_vm0, %v2152_v51 }
 0x430   : > { %1214 = vmatprep.mubr.f32.mxu0 %v3367_v1 }
 0x433   : > { %2161 = vmatmul.mubr.msk.f32.gmra.mxu0 %vm225_vm0, %v2153_v49 }
 0x434   : > { %1220 = vmatprep.mubr.f32.mxu0 %v3367_v1 }
 0x437   : > { %2162 = vmatmul.mubr.msk.f32.gmra.mxu0 %vm225_vm0, %v2154_v15 }
 0x438   : > { %1896 = vmatprep.mubr.f32.mxu0 %v3367_v1 }
 0x4db   : > { %v1180_v50 = vpop.f32.mrf.mxu0 }
 0x4dd   : > { %v3005_v52 = vpop.f32.mrf.mxu0 }
 0x4df   : > { %v1186_v53 = vpop.f32.mrf.mxu0 }
 0x4e1   : > { %v3007_v55 = vpop.f32.mrf.mxu0 }
 0x4e3   : > { %v1192_v56 = vpop.f32.mrf.mxu0 }
 0x4e4   : > { %v1227_v45 = vmin.f32 %v1180_v50, %v1192_v56 }
 0x4e5   : > { %v3009_v58 = vpop.f32.mrf.mxu0 }
 0x4e6   : > { %v1240_v42 = vmin.f32 %v3005_v52, %v3009_v58 }
 0x4e7   : > { %v1198_v62 = vpop.f32.mrf.mxu0 }
 0x4e8   : > { %v1228_v46 = vmin.f32 %v1186_v53, %v1198_v62 }
 0x4e9   : > { %v3011_v12 = vpop.f32.mrf.mxu0 }
 0x4ea   : > { %v1241_v33 = vmin.f32 %v3007_v55, %v3011_v12 }
 0x4eb   : > { %v1204_v34 = vpop.f32.mrf.mxu0 }
 0x4ec   : > { %v1229_v43 = vmin.f32 %v1227_v45, %v1204_v34 }
 0x4ed   : > { %v3013_v27 = vpop.f32.mrf.mxu0 }
 0x4ee   : > { %v1242_v3 = vmin.f32 %v1240_v42, %v3013_v27 }
 0x4ef   : > { %v1210_v40 = vpop.f32.mrf.mxu0 }
 0x4f0   : > { %v1230_v38 = vmin.f32 %v1228_v46, %v1210_v40 }
 0x4f1   : > { %v3015_v29 = vpop.f32.mrf.mxu0 }
 0x4f2   : > { %v1243_v4 = vmin.f32 %v1241_v33, %v3015_v29 }
 0x4f3   : > { %v1216_v44 = vpop.f32.mrf.mxu0 }
 0x4f4   : > { %v1231_v5 = vmin.f32 %v1229_v43, %v1216_v44 }
 0x4f5   : > { %v3017_v48 = vpop.f32.mrf.mxu0 }
 0x4f6   : > { %v1244_v49 = vmin.f32 %v1242_v3, %v3017_v48 }
 0x4f7   : > { %v1222_v19 = vpop.f32.mrf.mxu0 }
 0x4f8   : > { %v1232_v25 = vmin.f32 %v1230_v38, %v1222_v19 }
 0x4f9   : > { %v3025_v51 = vpop.f32.mrf.mxu0 }
 0x4fa   : > { %v1233_v15 = vmin.f32 %v1231_v5, %v1232_v25  ;;  %v1245_v1 = vmin.f32 %v1243_v4, %v3025_v51 }
 0x4fc   : > { %v1234_v0 = vrot.slane %v1233_v15, 4  ;;  %v1246_v2 = vmin.f32 %v1244_v49, %v1245_v1 }
 0x4fe   : > { %v1235_v37 = vmin.f32 %v1233_v15, %v1234_v0  ;;  %v1247_v36 = vrot.slane %v1246_v2, 4 }
 0x500   : > { %v1236_v45 = vrot.slane %v1235_v37, 2  ;;  %v1248_v46 = vmin.f32 %v1246_v2, %v1247_v36 }
 0x502   : > { %v1237_v35 = vmin.f32 %v1235_v37, %v1236_v45  ;;  %v1249_v30 = vrot.slane %v1248_v46, 2 }
 0x504   : > { %v1238_v42 = vrot.slane %v1237_v35, 1  ;;  %v1250_v31 = vmin.f32 %v1248_v46, %v1249_v30 }
 0x506   : > { %v1239_v33 = vmin.f32 %v1237_v35, %v1238_v42  ;;  %v1251_v43 = vrot.slane %v1250_v31, 1 }
 0x508   : > { %vm1253_vm4 = vcmp.eq.f32.partialorder %v1180_v50, %v1239_v33  ;;  %vm1255_vm5 = vcmp.eq.f32.partialorder %v1186_v53, %v1239_v33  ;;  %vm1257_vm6 = vcmp.eq.f32.partialorder %v1192_v56, %v1239_v33  ;;  %vm1259_vm8 = vcmp.eq.f32.partialorder %v1198_v62, %v1239_v33 }
 0x509   : > { %vm1261_vm9 = vcmp.eq.f32.partialorder %v1204_v34, %v1239_v33  ;;  %vm1263_vm10 = vcmp.eq.f32.partialorder %v1210_v40, %v1239_v33  ;;  %vm1265_vm11 = vcmp.eq.f32.partialorder %v1216_v44, %v1239_v33  ;;  %v1269_v38 = vsel %vm1253_vm4, %v2584_v54, 64 }
 0x50a   : > { %v1271_v0 = vsel %vm1255_vm5, %v2587_v59, 64  ;;  %v1273_v1 = vsel %vm1257_vm6, %v2590_v60, 64  ;;  %v1275_v36 = vsel %vm1259_vm8, %v2593_v61, 64  ;;  %vm1267_vm12 = vcmp.eq.f32.partialorder %v1222_v19, %v1239_v33 }
 0x50b   : > { %v1277_v30 = vsel %vm1261_vm9, %v2596_v63, 64  ;;  %vm1285_vm13 = vcmp.lt.s32.totalorder %v1269_v38, %v1273_v1  ;;  %vm1287_vm14 = vcmp.lt.s32.totalorder %v1271_v0, %v1275_v36  ;;  %v1252_v35 = vmin.f32 %v1250_v31, %v1251_v43 }
 0x50c   : > { %v1279_v37 = vsel %vm1263_vm10, %v2599_v10, 64  ;;  %v1281_v2 = vsel %vm1265_vm11, %v2602_v11, 64  ;;  %v1286_v50 = vsel %vm1285_vm13, %v1269_v38, %v1273_v1  ;;  %v1288_v53 = vsel %vm1287_vm14, %v1271_v0, %v1275_v36 }
 0x50d   : > { %v1283_v56 = vsel %vm1267_vm12, %v2605_v13, 64  ;;  %vm1289_vm15 = vcmp.lt.s32.totalorder %v1286_v50, %v1277_v30  ;;  %vm1291_vm1 = vcmp.lt.s32.totalorder %v1288_v53, %v1279_v37  ;;  %vm1254_vm2 = vcmp.eq.f32.partialorder %v3005_v52, %v1252_v35 }
 0x50e   : > { %v1290_v62 = vsel %vm1289_vm15, %v1286_v50, %v1277_v30  ;;  %v1292_v34 = vsel %vm1291_vm1, %v1288_v53, %v1279_v37  ;;  %vm1256_vm3 = vcmp.eq.f32.partialorder %v3007_v55, %v1252_v35  ;;  %vm1258_vm4 = vcmp.eq.f32.partialorder %v3009_v58, %v1252_v35  ;;  %v2179_v50 = vld [vmem:[%s3363_s2 + $0x50] sm:$0xff] }
 0x50f   : > { %vm1293_vm5 = vcmp.lt.s32.totalorder %v1290_v62, %v1281_v2  ;;  %vm1295_vm6 = vcmp.lt.s32.totalorder %v1292_v34, %v1283_v56  ;;  %vm1260_vm8 = vcmp.eq.f32.partialorder %v3011_v12, %v1252_v35  ;;  %vm1262_vm9 = vcmp.eq.f32.partialorder %v3013_v27, %v1252_v35 }
 0x510   : > { %v1294_v31 = vsel %vm1293_vm5, %v1290_v62, %v1281_v2  ;;  %v1296_v40 = vsel %vm1295_vm6, %v1292_v34, %v1283_v56  ;;  %v1270_v44 = vsel %vm1254_vm2, %v2584_v54, 64  ;;  %v1272_v19 = vsel %vm1256_vm3, %v2587_v59, 64  ;;  %v2180_v56 = vld [vmem:[%s3363_s2 + $0x58] sm:$0xff]  ;;  %v2181_v62 = vld [vmem:[%s3363_s2 + $0x60] sm:$0xff]  ;;  %v2182_v34 = vld [vmem:[%s3363_s2 + $0x68] sm:$0xff] }
 0x511   : > { %vm1297_vm10 = vcmp.lt.s32.totalorder %v1294_v31, %v1296_v40  ;;  %v1274_v52 = vsel %vm1258_vm4, %v2590_v60, 64  ;;  %vm1264_vm11 = vcmp.eq.f32.partialorder %v3015_v29, %v1252_v35  ;;  %v1276_v55 = vsel %vm1260_vm8, %v2593_v61, 64 }
 0x512   : > { %v1298_v3 = vsel %vm1297_vm10, %v1294_v31, %v1296_v40  ;;  %vm1266_vm12 = vcmp.eq.f32.partialorder %v3017_v48, %v1252_v35  ;;  %vm1308_vm13 = vcmp.lt.s32.totalorder %v1270_v44, %v1274_v52  ;;  %vm1268_vm14 = vcmp.eq.f32.partialorder %v3025_v51, %v1252_v35  ;;  %v2183_v31 = vld [vmem:[%s3363_s2 + $0x70] sm:$0xff] }
 0x513   : > { %v1299_v58 = vrot.slane %v1298_v3, 4  ;;  %v1278_v12 = vsel %vm1262_vm9, %v2596_v63, 64  ;;  %v1309_v27 = vsel %vm1308_vm13, %v1270_v44, %v1274_v52  ;;  %vm1310_vm15 = vcmp.lt.s32.totalorder %v1272_v19, %v1276_v55 }
 0x514   : > { %v1280_v4 = vsel %vm1264_vm11, %v2599_v10, 64  ;;  %v1311_v5 = vsel %vm1310_vm15, %v1272_v19, %v1276_v55  ;;  %vm1312_vm2 = vcmp.lt.s32.totalorder %v1309_v27, %v1278_v12  ;;  %v1282_v29 = vsel %vm1266_vm12, %v2602_v11, 64 }
 0x515   : > { %vm1300_vm1 = vcmp.lt.s32.totalorder %v1298_v3, %v1299_v58  ;;  %v1313_v49 = vsel %vm1312_vm2, %v1309_v27, %v1278_v12  ;;  %vm1314_vm3 = vcmp.lt.s32.totalorder %v1311_v5, %v1280_v4  ;;  %v1284_v48 = vsel %vm1268_vm14, %v2605_v13, 64 }
 0x516   : > { %v1301_v25 = vsel %vm1300_vm1, %v1298_v3, %v1299_v58  ;;  %v1315_v45 = vsel %vm1314_vm3, %v1311_v5, %v1280_v4  ;;  %vm1316_vm4 = vcmp.lt.s32.totalorder %v1313_v49, %v1282_v29  ;;  %v3387_v2 = vmov 1.0  }
 0x517   : > { %v1302_v15 = vrot.slane %v1301_v25, 2  ;;  %v1317_v51 = vsel %vm1316_vm4, %v1313_v49, %v1282_v29  ;;  %vm1318_vm5 = vcmp.lt.s32.totalorder %v1315_v45, %v1284_v48  ;;  %v3388_v53 = vmov 0.0  }
 0x518   : > { %v1319_v46 = vsel %vm1318_vm5, %v1315_v45, %v1284_v48  ;;  %v1063_v40 = vadd.f32 %v2899_v14, %v2688_v16  ;;  %v1064_v19 = vadd.f32 %v2901_v32, %v2690_v17  ;;  %v1065_v55 = vadd.f32 %v2903_v57, %v2692_v18 }
 0x519   : > { %vm1303_vm6 = vcmp.lt.s32.totalorder %v1301_v25, %v1302_v15  ;;  %vm1320_vm8 = vcmp.lt.s32.totalorder %v1317_v51, %v1319_v46  ;;  %v1066_v27 = vadd.f32 %v2905_v6, %v2694_v20  ;;  %v1067_v16 = vadd.f32 %v2907_v7, %v2696_v22 }
 0x51a   : > { %v1321_v42 = vsel %vm1320_vm8, %v1317_v51, %v1319_v46  ;;  %v1304_v33 = vsel %vm1303_vm6, %v1301_v25, %v1302_v15  ;;  %v1068_v32 = vadd.f32 %v2909_v39, %v2698_v24  ;;  %v1069_v57 = vadd.f32 %v2911_v8, %v2700_v26  ;;  %v3389_v8 = vld [vmem:[#allocation5_spill] sm:$0xff]  ;;  %v3391_v46 = vld [vmem:[#allocation7_spill] sm:$0xff] }
 0x51b   : > { %v1322_v43 = vrot.slane %v1321_v42, 4  ;;  %v1305_v38 = vrot.slane %v1304_v33, 1  ;;  %v1070_v6 = vadd.f32 %v2913_v41, %v2702_v28  ;;  %v3390_v28 = vld [vmem:[#allocation6_spill] sm:$0xff] }
 0x51d   : > { %vm1323_vm9 = vcmp.lt.s32.totalorder %v1321_v42, %v1322_v43  ;;  %vm1306_vm11 = vcmp.lt.s32.totalorder %v1304_v33, %v1305_v38 }
 0x51e   : > { %v1324_v0 = vsel %vm1323_vm9, %v1321_v42, %v1322_v43  ;;  %v1307_v35 = vsel %vm1306_vm11, %v1304_v33, %v1305_v38  ;;  %v3392_v33 = vld [vmem:[#allocation8_spill] sm:$0xff] }
 0x51f   : > { %v1325_v1 = vrot.slane %v1324_v0, 2  ;;  %vm1345_vm14 = vcmp.eq.s32.totalorder %v2605_v13, %v1307_v35  ;;  %vm1343_vm1 = vcmp.eq.s32.totalorder %v2602_v11, %v1307_v35  ;;  %vm1341_vm3 = vcmp.eq.s32.totalorder %v2599_v10, %v1307_v35 }
 0x520   : > { %vm1339_vm5 = vcmp.eq.s32.totalorder %v2596_v63, %v1307_v35  ;;  %vm1337_vm8 = vcmp.eq.s32.totalorder %v2593_v61, %v1307_v35 }
 0x521   : > { %vm1326_vm10 = vcmp.lt.s32.totalorder %v1324_v0, %v1325_v1 }
 0x522   : > { %v1327_v36 = vsel %vm1326_vm10, %v1324_v0, %v1325_v1  ;;  %vm1335_vm10 = vcmp.eq.s32.totalorder %v2590_v60, %v1307_v35  ;;  %v2206_v0 = vld [vmem:[%s3362_s1 + $0xc8] sm:$0xff]  ;;  %v2207_v1 = vld [vmem:[%s3362_s1 + $0xd0] sm:$0xff] }
 0x523   : > { %v1328_v30 = vrot.slane %v1327_v36, 1 }
 0x525   : > { %vm1329_vm12 = vcmp.lt.s32.totalorder %v1327_v36, %v1328_v30 }
 0x526   : > { %v1330_v37 = vsel %vm1329_vm12, %v1327_v36, %v1328_v30  ;;  %vm1333_vm12 = vcmp.eq.s32.totalorder %v2587_v59, %v1307_v35  ;;  %v2208_v36 = vld [vmem:[%s3362_s1 + $0xd8] sm:$0xff]  ;;  %v2209_v30 = vld [vmem:[%s3362_s1 + $0xe0] sm:$0xff] }
 0x527   : > { %vm1346_vm13 = vcmp.eq.s32.totalorder %v2605_v13, %v1330_v37  ;;  %vm1344_vm15 = vcmp.eq.s32.totalorder %v2602_v11, %v1330_v37  ;;  %vm1342_vm2 = vcmp.eq.s32.totalorder %v2599_v10, %v1330_v37  ;;  %vm1340_vm4 = vcmp.eq.s32.totalorder %v2596_v63, %v1330_v37 }
 0x528   : > { %2184 = vmatprep.subr.msk.mxu1 %vm1346_vm13, %v3387_v2  ;;  %vm1338_vm6 = vcmp.eq.s32.totalorder %v2593_v61, %v1330_v37  ;;  %vm1336_vm9 = vcmp.eq.s32.totalorder %v2590_v60, %v1330_v37  ;;  %vm1334_vm11 = vcmp.eq.s32.totalorder %v2587_v59, %v1330_v37  ;;  %vm1332_vm13 = vcmp.eq.s32.totalorder %v2584_v54, %v1330_v37  ;;  %v2211_v37 = vld [vmem:[%s3362_s1 + $0xf0] sm:$0xff] }
 0x529   : > { %2185 = vmatpush1.msk.msra.mxu1 %vm1345_vm14, %v3387_v2  ;;  %vm1331_vm14 = vcmp.eq.s32.totalorder %v2584_v54, %v1307_v35  ;;  %v2210_v35 = vld [vmem:[%s3362_s1 + $0xe8] sm:$0xff] }
 0x52a   : > { %2186 = vmatprep.subr.msk.mxu1 %vm1344_vm15, %v3387_v2 }
 0x52b   : > { %2187 = vmatpush1.msk.msra.mxu1 %vm1343_vm1, %v3387_v2 }
 0x52c   : > { %2188 = vmatprep.subr.msk.mxu1 %vm1342_vm2, %v3387_v2 }
 0x52d   : > { %2189 = vmatpush1.msk.msra.mxu1 %vm1341_vm3, %v3387_v2 }
 0x52e   : > { %2190 = vmatprep.subr.msk.mxu1 %vm1340_vm4, %v3387_v2 }
 0x52f   : > { %2191 = vmatpush1.msk.msra.mxu1 %vm1339_vm5, %v3387_v2 }
 0x530   : > { %2192 = vmatprep.subr.msk.mxu1 %vm1338_vm6, %v3387_v2 }
 0x531   : > { %2193 = vmatpush1.msk.msra.mxu1 %vm1337_vm8, %v3387_v2 }
 0x532   : > { %2194 = vmatprep.subr.msk.mxu1 %vm1336_vm9, %v3387_v2 }
 0x533   : > { %2195 = vmatpush1.msk.msra.mxu1 %vm1335_vm10, %v3387_v2 }
 0x534   : > { %2196 = vmatprep.subr.msk.mxu1 %vm1334_vm11, %v3387_v2 }
 0x535   : > { %2197 = vmatpush1.msk.msra.mxu1 %vm1333_vm12, %v3387_v2 }
 0x536   : > { %2198 = vmatprep.subr.msk.mxu1 %vm1332_vm13, %v3387_v2 }
 0x537   : > { %2199 = vmatpush1.msk.msra.mxu1 %vm1331_vm14, %v3387_v2 }
 0x538   : > { %2200 = vmatmul.mubr.msk.f32.vlgmr.msra.gmra.mxu1 %vm520_vm7, %v2179_v50  ;;  %v2212_v50 = vld [vmem:[%s3362_s1 + $0xf8] sm:$0xff] }
 0x539   : > { %1470 = vmatprep.mubr.f32.mxu1 %v3388_v53 }
 0x53c   : > { %2201 = vmatmul.mubr.msk.f32.gmra.mxu1 %vm520_vm7, %v2180_v56 }
 0x53d   : > { %1476 = vmatprep.mubr.f32.mxu1 %v3388_v53 }
 0x540   : > { %2202 = vmatmul.mubr.msk.f32.gmra.mxu1 %vm520_vm7, %v2181_v62 }
 0x541   : > { %1482 = vmatprep.mubr.f32.mxu1 %v3388_v53 }
 0x544   : > { %2203 = vmatmul.mubr.msk.f32.gmra.mxu1 %vm520_vm7, %v2182_v34 }
 0x545   : > { %1488 = vmatprep.mubr.f32.mxu1 %v3388_v53 }
 0x548   : > { %2204 = vmatmul.mubr.msk.f32.gmra.mxu1 %vm520_vm7, %v2183_v31 }
 0x549   : > { %1610 = vmatprep.mubr.f32.mxu1 %v3388_v53 }
 0x5f8   : > { %v1466_v44 = vpop.f32.mrf.mxu1 }
 0x5f9   : > { %v3114_v52 = vadd.f32 %v1466_v44, %v1063_v40 }
 0x5fa   : > { %v1468_v3 = vpop.f32.mrf.mxu1 }
 0x5fb   : > { %v3118_v58 = vadd.f32 %v1468_v3, %v1064_v19 }
 0x5fc   : > { %v1472_v12 = vpop.f32.mrf.mxu1 }
 0x5fd   : > { %v3122_v4 = vadd.f32 %v1472_v12, %v1065_v55  ;;  %v1505_v43 = vsub.f32 %v3392_v33, %v1472_v12 }
 0x5fe   : > { %v1474_v5 = vpop.f32.mrf.mxu1 }
 0x5ff   : > { %v3126_v14 = vadd.f32 %v1474_v5, %v1066_v27  ;;  %v1506_v42 = vsub.f32 %v3391_v46, %v1474_v5 }
 0x600   : > { %v1478_v17 = vpop.f32.mrf.mxu1 }
 0x601   : > { %v3130_v25 = vadd.f32 %v1478_v17, %v1067_v16  ;;  %v1507_v41 = vsub.f32 %v3390_v28, %v1478_v17 }
 0x602   : > { %v1480_v18 = vpop.f32.mrf.mxu1 }
 0x603   : > { %v3134_v29 = vadd.f32 %v1480_v18, %v1068_v32  ;;  %v1508_v51 = vsub.f32 %v3389_v8, %v1480_v18 }
 0x604   : > { %v1484_v20 = vpop.f32.mrf.mxu1 }
 0x605   : > { %v3138_v49 = vadd.f32 %v1484_v20, %v1069_v57  ;;  %v1509_v26 = vsub.f32 %v2930_v23, %v1484_v20  ;;  %v2205_v23 = vld [vmem:[%s3362_s1 + $0xc0] sm:$0xff] }
 0x606   : > { %v1486_v22 = vpop.f32.mrf.mxu1 }
 0x607   : > { %v3140_v7 = vadd.f32 %v1486_v22, %v1070_v6  ;;  %v1510_v45 = vsub.f32 %v2925_v47, %v1486_v22  ;;  %v3394_v47 = vld [vmem:[#allocation10_spill] sm:$0xff] }
 0x608   : > { %v1490_v15 = vpop.f32.mrf.mxu1  ;;  %v1503_v38 = vsub.f32 %v3394_v47, %v1466_v44 }
 0x609   : > { %v1511_v39 = vsub.f32 %v2921_v21, %v1490_v15 }
 0x60a   : > { %v1492_v48 = vpop.f32.mrf.mxu1 }
 0x60b   : > { %v1512_v24 = vsub.f32 %v2917_v9, %v1492_v48  ;;  %v3393_v9 = vld [vmem:[#allocation9_spill] sm:$0xff] }
 0x60c   : > { %v1504_v21 = vsub.f32 %v3393_v9, %v1468_v3 }
 0x60d   : > { %1568 = vmatprep.subr.mxu1 %v1512_v24 }
 0x60e   : > { %1569 = vmatpush1.msra.mxu1 %v1511_v39 }
 0x60f   : > { %1570 = vmatprep.subr.mxu1 %v1510_v45 }
 0x610   : > { %1571 = vmatpush1.msra.mxu1 %v1509_v26 }
 0x611   : > { %1572 = vmatprep.subr.mxu1 %v1508_v51 }
 0x612   : > { %1573 = vmatpush1.msra.mxu1 %v1507_v41 }
 0x613   : > { %1574 = vmatprep.subr.mxu1 %v1506_v42 }
 0x614   : > { %1575 = vmatpush1.msra.mxu1 %v1505_v43 }
 0x615   : > { %1576 = vmatprep.subr.mxu1 %v1504_v21 }
 0x616   : > { %1577 = vmatpush1.msra.mxu1 %v1503_v38 }
 0x617   : > { %2213 = vmatmul.mubr.msk.f32.vlgmr.msra.gmra.mxu1 %vm225_vm0, %v2205_v23 }
 0x618   : > { %1616 = vmatprep.mubr.f32.mxu1 %v3388_v53 }
 0x61b   : > { %2214 = vmatmul.mubr.msk.f32.gmra.mxu1 %vm225_vm0, %v2206_v0 }
 0x61c   : > { %1622 = vmatprep.mubr.f32.mxu1 %v3388_v53 }
 0x61f   : > { %2215 = vmatmul.mubr.msk.f32.gmra.mxu1 %vm225_vm0, %v2207_v1 }
 0x620   : > { %1628 = vmatprep.mubr.f32.mxu1 %v3388_v53 }
 0x623   : > { %2216 = vmatmul.mubr.msk.f32.gmra.mxu1 %vm225_vm0, %v2208_v36 }
 0x624   : > { %1634 = vmatprep.mubr.f32.mxu1 %v3388_v53 }
 0x627   : > { %2217 = vmatmul.mubr.msk.f32.gmra.mxu1 %vm225_vm0, %v2209_v30 }
 0x628   : > { %1640 = vmatprep.mubr.f32.mxu1 %v3388_v53 }
 0x62b   : > { %2218 = vmatmul.mubr.msk.f32.gmra.mxu1 %vm225_vm0, %v2210_v35 }
 0x62c   : > { %1646 = vmatprep.mubr.f32.mxu1 %v3388_v53 }
 0x62f   : > { %2219 = vmatmul.mubr.msk.f32.gmra.mxu1 %vm225_vm0, %v2211_v37 }
 0x630   : > { %1652 = vmatprep.mubr.f32.mxu1 %v3388_v53 }
 0x633   : > { %2220 = vmatmul.mubr.msk.f32.gmra.mxu1 %vm225_vm0, %v2212_v50 }
 0x6d7   : > { %v1612_v56 = vpop.f32.mrf.mxu1 }
 0x6d9   : > { %v3191_v62 = vpop.f32.mrf.mxu1 }
 0x6db   : > { %v1618_v34 = vpop.f32.mrf.mxu1 }
 0x6dd   : > { %v3193_v31 = vpop.f32.mrf.mxu1 }
 0x6df   : > { %v1624_v40 = vpop.f32.mrf.mxu1 }
 0x6e0   : > { %v1659_v17 = vmin.f32 %v1612_v56, %v1624_v40 }
 0x6e1   : > { %v3195_v44 = vpop.f32.mrf.mxu1 }
 0x6e2   : > { %v1672_v57 = vmin.f32 %v3191_v62, %v3195_v44 }
 0x6e3   : > { %v1630_v19 = vpop.f32.mrf.mxu1 }
 0x6e4   : > { %v1660_v32 = vmin.f32 %v1618_v34, %v1630_v19 }
 0x6e5   : > { %v3197_v3 = vpop.f32.mrf.mxu1 }
 0x6e6   : > { %v1673_v20 = vmin.f32 %v3193_v31, %v3197_v3 }
 0x6e7   : > { %v1636_v55 = vpop.f32.mrf.mxu1 }
 0x6e8   : > { %v1661_v6 = vmin.f32 %v1659_v17, %v1636_v55 }
 0x6e9   : > { %v3199_v12 = vpop.f32.mrf.mxu1 }
 0x6ea   : > { %v1674_v48 = vmin.f32 %v1672_v57, %v3199_v12 }
 0x6eb   : > { %v1642_v27 = vpop.f32.mrf.mxu1 }
 0x6ec   : > { %v1662_v22 = vmin.f32 %v1660_v32, %v1642_v27 }
 0x6ed   : > { %v3201_v5 = vpop.f32.mrf.mxu1 }
 0x6ee   : > { %v1675_v24 = vmin.f32 %v1673_v20, %v3201_v5 }
 0x6ef   : > { %v1648_v16 = vpop.f32.mrf.mxu1 }
 0x6f0   : > { %v1663_v39 = vmin.f32 %v1661_v6, %v1648_v16 }
 0x6f1   : > { %v3203_v18 = vpop.f32.mrf.mxu1 }
 0x6f2   : > { %v1676_v8 = vmin.f32 %v1674_v48, %v3203_v18 }
 0x6f3   : > { %v1654_v15 = vpop.f32.mrf.mxu1 }
 0x6f4   : > { %v1664_v45 = vmin.f32 %v1662_v22, %v1654_v15 }
 0x6f5   : > { %v3211_v26 = vpop.f32.mrf.mxu1 }
 0x6f6   : > { %v1665_v51 = vmin.f32 %v1663_v39, %v1664_v45  ;;  %v1677_v28 = vmin.f32 %v1675_v24, %v3211_v26 }
 0x6f8   : > { %v1666_v41 = vrot.slane %v1665_v51, 4  ;;  %v1678_v46 = vmin.f32 %v1676_v8, %v1677_v28 }
 0x6fa   : > { %v1667_v42 = vmin.f32 %v1665_v51, %v1666_v41  ;;  %v1679_v33 = vrot.slane %v1678_v46, 4 }
 0x6fc   : > { %v1668_v43 = vrot.slane %v1667_v42, 2  ;;  %v1680_v9 = vmin.f32 %v1678_v46, %v1679_v33 }
 0x6fe   : > { %v1669_v21 = vmin.f32 %v1667_v42, %v1668_v43  ;;  %v1681_v47 = vrot.slane %v1680_v9, 2 }
 0x700   : > { %v1670_v38 = vrot.slane %v1669_v21, 1  ;;  %v1682_v23 = vmin.f32 %v1680_v9, %v1681_v47 }
 0x702   : > { %v1671_v0 = vmin.f32 %v1669_v21, %v1670_v38  ;;  %v1683_v1 = vrot.slane %v1682_v23, 1 }
 0x704   : > { %vm1685_vm0 = vcmp.eq.f32.partialorder %v1612_v56, %v1671_v0  ;;  %vm1687_vm15 = vcmp.eq.f32.partialorder %v1618_v34, %v1671_v0  ;;  %vm1689_vm1 = vcmp.eq.f32.partialorder %v1624_v40, %v1671_v0  ;;  %vm1691_vm2 = vcmp.eq.f32.partialorder %v1630_v19, %v1671_v0 }
 0x705   : > { %vm1693_vm3 = vcmp.eq.f32.partialorder %v1636_v55, %v1671_v0  ;;  %vm1695_vm4 = vcmp.eq.f32.partialorder %v1642_v27, %v1671_v0  ;;  %vm1697_vm5 = vcmp.eq.f32.partialorder %v1648_v16, %v1671_v0  ;;  %v1701_v36 = vsel %vm1685_vm0, %v2584_v54, 64 }
 0x706   : > { %v1703_v30 = vsel %vm1687_vm15, %v2587_v59, 64  ;;  %v1705_v35 = vsel %vm1689_vm1, %v2590_v60, 64  ;;  %v1707_v37 = vsel %vm1691_vm2, %v2593_v61, 64  ;;  %vm1699_vm6 = vcmp.eq.f32.partialorder %v1654_v15, %v1671_v0 }
 0x707   : > { %v1709_v50 = vsel %vm1693_vm3, %v2596_v63, 64  ;;  %vm1717_vm8 = vcmp.lt.s32.totalorder %v1701_v36, %v1705_v35  ;;  %vm1719_vm9 = vcmp.lt.s32.totalorder %v1703_v30, %v1707_v37  ;;  %v1684_v56 = vmin.f32 %v1682_v23, %v1683_v1 }
 0x708   : > { %v1711_v34 = vsel %vm1695_vm4, %v2599_v10, 64  ;;  %v1713_v40 = vsel %vm1697_vm5, %v2602_v11, 64  ;;  %v1718_v19 = vsel %vm1717_vm8, %v1701_v36, %v1705_v35  ;;  %v1720_v55 = vsel %vm1719_vm9, %v1703_v30, %v1707_v37 }
 0x709   : > { %v1715_v27 = vsel %vm1699_vm6, %v2605_v13, 64  ;;  %vm1721_vm10 = vcmp.lt.s32.totalorder %v1718_v19, %v1709_v50  ;;  %vm1723_vm11 = vcmp.lt.s32.totalorder %v1720_v55, %v1711_v34  ;;  %vm1686_vm12 = vcmp.eq.f32.partialorder %v3191_v62, %v1684_v56 }
 0x70a   : > { %v1722_v16 = vsel %vm1721_vm10, %v1718_v19, %v1709_v50  ;;  %v1724_v17 = vsel %vm1723_vm11, %v1720_v55, %v1711_v34  ;;  %vm1688_vm13 = vcmp.eq.f32.partialorder %v3193_v31, %v1684_v56  ;;  %vm1690_vm14 = vcmp.eq.f32.partialorder %v3195_v44, %v1684_v56 }
 0x70b   : > { %vm1725_vm0 = vcmp.lt.s32.totalorder %v1722_v16, %v1713_v40  ;;  %vm1727_vm15 = vcmp.lt.s32.totalorder %v1724_v17, %v1715_v27  ;;  %vm1692_vm1 = vcmp.eq.f32.partialorder %v3197_v3, %v1684_v56  ;;  %vm1694_vm2 = vcmp.eq.f32.partialorder %v3199_v12, %v1684_v56 }
 0x70c   : > { %v1726_v32 = vsel %vm1725_vm0, %v1722_v16, %v1713_v40  ;;  %v1728_v57 = vsel %vm1727_vm15, %v1724_v17, %v1715_v27  ;;  %v1702_v20 = vsel %vm1686_vm12, %v2584_v54, 64  ;;  %v1704_v6 = vsel %vm1688_vm13, %v2587_v59, 64 }
 0x70d   : > { %vm1729_vm3 = vcmp.lt.s32.totalorder %v1726_v32, %v1728_v57  ;;  %v1706_v62 = vsel %vm1690_vm14, %v2590_v60, 64  ;;  %vm1696_vm4 = vcmp.eq.f32.partialorder %v3201_v5, %v1684_v56  ;;  %v1708_v31 = vsel %vm1692_vm1, %v2593_v61, 64 }
 0x70e   : > { %v1730_v22 = vsel %vm1729_vm3, %v1726_v32, %v1728_v57  ;;  %vm1698_vm5 = vcmp.eq.f32.partialorder %v3203_v18, %v1684_v56  ;;  %vm1740_vm6 = vcmp.lt.s32.totalorder %v1702_v20, %v1706_v62  ;;  %vm1700_vm8 = vcmp.eq.f32.partialorder %v3211_v26, %v1684_v56 }
 0x70f   : > { %v1731_v44 = vrot.slane %v1730_v22, 4  ;;  %v1710_v3 = vsel %vm1694_vm2, %v2596_v63, 64  ;;  %v1741_v12 = vsel %vm1740_vm6, %v1702_v20, %v1706_v62  ;;  %vm1742_vm9 = vcmp.lt.s32.totalorder %v1704_v6, %v1708_v31 }
 0x710   : > { %v1712_v15 = vsel %vm1696_vm4, %v2599_v10, 64  ;;  %v1743_v48 = vsel %vm1742_vm9, %v1704_v6, %v1708_v31  ;;  %vm1744_vm11 = vcmp.lt.s32.totalorder %v1741_v12, %v1710_v3  ;;  %v1714_v5 = vsel %vm1698_vm5, %v2602_v11, 64 }
 0x711   : > { %vm1732_vm10 = vcmp.lt.s32.totalorder %v1730_v22, %v1731_v44  ;;  %v1745_v39 = vsel %vm1744_vm11, %v1741_v12, %v1710_v3  ;;  %vm1746_vm12 = vcmp.lt.s32.totalorder %v1743_v48, %v1712_v15  ;;  %v1716_v18 = vsel %vm1700_vm8, %v2605_v13, 64 }
 0x712   : > { %v1733_v24 = vsel %vm1732_vm10, %v1730_v22, %v1731_v44  ;;  %v1747_v8 = vsel %vm1746_vm12, %v1743_v48, %v1712_v15  ;;  %vm1748_vm13 = vcmp.lt.s32.totalorder %v1745_v39, %v1714_v5 }
 0x713   : > { %v1734_v45 = vrot.slane %v1733_v24, 2  ;;  %v1749_v26 = vsel %vm1748_vm13, %v1745_v39, %v1714_v5  ;;  %vm1750_vm14 = vcmp.lt.s32.totalorder %v1747_v8, %v1716_v18 }
 0x714   : > { %v1751_v51 = vsel %vm1750_vm14, %v1747_v8, %v1716_v18 }
 0x715   : > { %vm1735_vm0 = vcmp.lt.s32.totalorder %v1733_v24, %v1734_v45  ;;  %vm1752_vm15 = vcmp.lt.s32.totalorder %v1749_v26, %v1751_v51 }
 0x716   : > { %v1753_v28 = vsel %vm1752_vm15, %v1749_v26, %v1751_v51  ;;  %v1736_v41 = vsel %vm1735_vm0, %v1733_v24, %v1734_v45 }
 0x717   : > { %v1754_v46 = vrot.slane %v1753_v28, 4  ;;  %v1737_v42 = vrot.slane %v1736_v41, 1 }
 0x719   : > { %vm1755_vm1 = vcmp.lt.s32.totalorder %v1753_v28, %v1754_v46  ;;  %vm1738_vm3 = vcmp.lt.s32.totalorder %v1736_v41, %v1737_v42 }
 0x71a   : > { %v1756_v33 = vsel %vm1755_vm1, %v1753_v28, %v1754_v46  ;;  %v1739_v47 = vsel %vm1738_vm3, %v1736_v41, %v1737_v42 }
 0x71b   : > { %v1757_v43 = vrot.slane %v1756_v33, 2  ;;  %vm1777_vm6 = vcmp.eq.s32.totalorder %v2605_v13, %v1739_v47  ;;  %vm1775_vm9 = vcmp.eq.s32.totalorder %v2602_v11, %v1739_v47  ;;  %vm1773_vm11 = vcmp.eq.s32.totalorder %v2599_v10, %v1739_v47 }
 0x71c   : > { %vm1771_vm13 = vcmp.eq.s32.totalorder %v2596_v63, %v1739_v47  ;;  %vm1769_vm0 = vcmp.eq.s32.totalorder %v2593_v61, %v1739_v47  ;;  %vm1767_vm1 = vcmp.eq.s32.totalorder %v2590_v60, %v1739_v47  ;;  %vm1765_vm3 = vcmp.eq.s32.totalorder %v2587_v59, %v1739_v47 }
 0x71d   : > { %vm1758_vm2 = vcmp.lt.s32.totalorder %v1756_v33, %v1757_v43 }
 0x71e   : > { %v1759_v9 = vsel %vm1758_vm2, %v1756_v33, %v1757_v43 }
 0x71f   : > { %v1760_v21 = vrot.slane %v1759_v9, 1 }
 0x721   : > { %vm1761_vm4 = vcmp.lt.s32.totalorder %v1759_v9, %v1760_v21 }
 0x722   : > { %v1762_v38 = vsel %vm1761_vm4, %v1759_v9, %v1760_v21 }
 0x723   : > { %vm1778_vm5 = vcmp.eq.s32.totalorder %v2605_v13, %v1762_v38  ;;  %vm1776_vm8 = vcmp.eq.s32.totalorder %v2602_v11, %v1762_v38  ;;  %vm1774_vm10 = vcmp.eq.s32.totalorder %v2599_v10, %v1762_v38  ;;  %vm1772_vm12 = vcmp.eq.s32.totalorder %v2596_v63, %v1762_v38  ;;  %v2241_v63 = vld [vmem:[%s3363_s2 + $0x98] sm:$0xff] }
 0x724   : > { %2242 = vmatprep.subr.msk.mxu0 %vm1778_vm5, %v3387_v2  ;;  %vm1770_vm14 = vcmp.eq.s32.totalorder %v2593_v61, %v1762_v38  ;;  %vm1768_vm15 = vcmp.eq.s32.totalorder %v2590_v60, %v1762_v38  ;;  %vm1766_vm2 = vcmp.eq.s32.totalorder %v2587_v59, %v1762_v38  ;;  %vm1764_vm4 = vcmp.eq.s32.totalorder %v2584_v54, %v1762_v38  ;;  %v2237_v61 = vld [vmem:[%s3363_s2 + $0x78] sm:$0xff]  ;;  %v2238_v59 = vld [vmem:[%s3363_s2 + $0x80] sm:$0xff]  ;;  %v2239_v60 = vld [vmem:[%s3363_s2 + $0x88] sm:$0xff] }
 0x725   : > { %2243 = vmatpush1.msk.msra.mxu0 %vm1777_vm6, %v3387_v2  ;;  %vm1763_vm5 = vcmp.eq.s32.totalorder %v2584_v54, %v1739_v47  ;;  %v2240_v54 = vld [vmem:[%s3363_s2 + $0x90] sm:$0xff] }
 0x726   : > { %2244 = vmatprep.subr.msk.mxu0 %vm1776_vm8, %v3387_v2 }
 0x727   : > { %2245 = vmatpush1.msk.msra.mxu0 %vm1775_vm9, %v3387_v2 }
 0x728   : > { %2246 = vmatprep.subr.msk.mxu0 %vm1774_vm10, %v3387_v2 }
 0x729   : > { %2247 = vmatpush1.msk.msra.mxu0 %vm1773_vm11, %v3387_v2 }
 0x72a   : > { %2248 = vmatprep.subr.msk.mxu0 %vm1772_vm12, %v3387_v2 }
 0x72b   : > { %2249 = vmatpush1.msk.msra.mxu0 %vm1771_vm13, %v3387_v2 }
 0x72c   : > { %2250 = vmatprep.subr.msk.mxu0 %vm1770_vm14, %v3387_v2 }
 0x72d   : > { %2251 = vmatpush1.msk.msra.mxu0 %vm1769_vm0, %v3387_v2 }
 0x72e   : > { %2252 = vmatprep.subr.msk.mxu0 %vm1768_vm15, %v3387_v2 }
 0x72f   : > { %2253 = vmatpush1.msk.msra.mxu0 %vm1767_vm1, %v3387_v2 }
 0x730   : > { %2254 = vmatprep.subr.msk.mxu0 %vm1766_vm2, %v3387_v2 }
 0x731   : > { %2255 = vmatpush1.msk.msra.mxu0 %vm1765_vm3, %v3387_v2 }
 0x732   : > { %2256 = vmatprep.subr.msk.mxu0 %vm1764_vm4, %v3387_v2 }
 0x733   : > { %2257 = vmatpush1.msk.msra.mxu0 %vm1763_vm5, %v3387_v2 }
 0x734   : > { %2258 = vmatmul.mubr.msk.f32.vlgmr.msra.gmra.mxu0 %vm520_vm7, %v2237_v61 }
 0x735   : > { %1902 = vmatprep.mubr.f32.mxu0 %v3388_v53 }
 0x738   : > { %2259 = vmatmul.mubr.msk.f32.gmra.mxu0 %vm520_vm7, %v2238_v59 }
 0x739   : > { %1908 = vmatprep.mubr.f32.mxu0 %v3388_v53 }
 0x73c   : > { %2260 = vmatmul.mubr.msk.f32.gmra.mxu0 %vm520_vm7, %v2239_v60 }
 0x73d   : > { %1914 = vmatprep.mubr.f32.mxu0 %v3388_v53 }
 0x740   : > { %2261 = vmatmul.mubr.msk.f32.gmra.mxu0 %vm520_vm7, %v2240_v54 }
 0x741   : > { %1920 = vmatprep.mubr.f32.mxu0 %v3388_v53 }
 0x744   : > { %2262 = vmatmul.mubr.msk.f32.gmra.mxu0 %vm520_vm7, %v2241_v63 }
 0x7f4   : > { %v1898_v10 = vpop.f32.mrf.mxu0 }
 0x7f5   : > { %v1925_v11 = vadd.f32 %v1898_v10, %v3114_v52 }
 0x7f6   : > { %v1900_v13 = vpop.f32.mrf.mxu0 }
 0x7f7   : > { %1933 = vst [vmem:[%s188_s8] sm:$0xff] %v1925_v11  ;;  %v1926_v2 = vadd.f32 %v1900_v13, %v3118_v58 }
 0x7f8   : > { %v1904_v23 = vpop.f32.mrf.mxu0 }
 0x7f9   : > { %1934 = vst [vmem:[%s188_s8 + $0x8] sm:$0xff] %v1926_v2  ;;  %v1927_v53 = vadd.f32 %v1904_v23, %v3122_v4 }
 0x7fa   : > { %v1906_v0 = vpop.f32.mrf.mxu0 }
 0x7fb   : > { %1935 = vst [vmem:[%s188_s8 + $0x10] sm:$0xff] %v1927_v53  ;;  %v1928_v1 = vadd.f32 %v1906_v0, %v3126_v14 }
 0x7fc   : > { %v1910_v36 = vpop.f32.mrf.mxu0 }
 0x7fd   : > { %1936 = vst [vmem:[%s188_s8 + $0x18] sm:$0xff] %v1928_v1  ;;  %v1929_v30 = vadd.f32 %v1910_v36, %v3130_v25 }
 0x7fe   : > { %v1912_v35 = vpop.f32.mrf.mxu0 }
 0x7ff   : > { %1937 = vst [vmem:[%s188_s8 + $0x20] sm:$0xff] %v1929_v30  ;;  %v1930_v52 = vadd.f32 %v1912_v35, %v3134_v29 }
 0x800   : > { %v1916_v58 = vpop.f32.mrf.mxu0 }
 0x801   : > { %1938 = vst [vmem:[%s188_s8 + $0x28] sm:$0xff] %v1930_v52  ;;  %v1931_v4 = vadd.f32 %v1916_v58, %v3138_v49 }
 0x802   : > { %v1918_v37 = vpop.f32.mrf.mxu0 }
 0x803   : > { %1939 = vst [vmem:[%s188_s8 + $0x30] sm:$0xff] %v1931_v4  ;;  %v1932_v14 = vadd.f32 %v1918_v37, %v3140_v7 }
 0x804   : > { %v1922_v25 = vpop.f32.mrf.mxu0 }
 0x805   : > { %1940 = vst [vmem:[%s188_s8 + $0x38] sm:$0xff] %v1932_v14 }
 0x806   : > { %v1923_v29 = vpop.f32.mrf.mxu0 }
 0x807   : > { %2342 = shalt.err (!%p2339_p5)
}
 0x808   : > { %s2343_s28 = scalar_lea.hbm %s3309_s19, 1024  ;;  %s2347_s4 = scalar_lea.hbm %s3364_s3, 2048 }
 0x809   : > { %p2344_p6 = scmp.ne.s32.totalorder %s3309_s19, %s2343_s28  ;;  %p2348_p10 = scmp.lt.s32.totalorder %s3309_s19, %s3364_s3 }
 0x80a   : > { %p2349_p11 = scmp.lt.s32.totalorder %s2347_s4, %s2343_s28 }
 0x80b   : > { %p2345_p7 = pnand %p2344_p6, %p2472_p4 }
 0x80c   : > { %p2350_p12 = por %p2349_p11, %p2348_p10 }
 0x80d   : > { %p2346_p9 = pneg %p2345_p7 }
 0x80f   : > { %p2351_p13 = pnand %p2350_p12, %p2346_p9 }
 0x811   : > { %2354 = shalt.err (!%p2351_p13)
}
 0x812   : > { %s2410_s7 = smov 256   ;;  %s2411_s8 = smov 16  }
 0x813   : > { %2270 = dma.vmem_to_hbm [thread:$0]  (%p2472_p4), %s3311_s10, 1024, %s3309_s19, %s3316_s15, %s2410_s7, %s2410_s7, %s2411_s8  }
 0x814 PF: > { %p2276_p0 = scmp.ge.s32.totalorder %s2405_s17, 2  ;;  %s1972_s9 = sand.u32 1, %s2385_s12  }
 0x815   : > { %s1973_s11 = scalar_lea.sflag [#allocation3], %s1972_s9 }
 0x816   : > { %p2273_p1 = pnand %p2276_p0, %p2479_p8 }
 0x818   : > { %p2274_p2 = pneg %p2273_p1 }
 0x81a   : > { %2380 = dma.done.wait (%p2274_p2), %s1973_s11, 1024  }
 0x81b   : > { %2382 = vsyncadd (%p2274_p2), %s1973_s11, 4294966272  ;;  %s16_s17 = sadd.s32 1, %s2405_s17   ;;  %s3395_s12 = smov %s2389_s13 }
 0x81c   : > { %p13_p3 = scmp.ge.s32.totalorder %s16_s17, 4   ;;  %s3396_s13 = smov %s2393_s14 }
 0x81d   : > { %s3397_s14 = smov %s2485_s25  ;;  %s3398_s15 = smov %s2401_s16 }
 0x81e   : > { %s3399_s16 = smov %s3401_s20  ;;  %15 = sbr.rel (!%p13_p3) target bundleno = 4 (0x4), region = 73 }
 0x823   :  { %1978 = vsyncpa [#allocation3], 1 }
 0x824   :  { %1980 = vsyncpa [#allocation3 + $0x1], 1 }

</bundles_post_ra>
